<compile_context>
chip_gen: v7x
topology: tpu7x:2x2x1
jax: 0.10.0
libtpu: 0.0.40
codegen_flags: <defaults>
</compile_context>

<pallas_src>
import functools

import jax
import jax.numpy as jnp
from jax.experimental import pallas as pl
from jax.experimental.pallas import tpu as pltpu


def _round_up(x, m):
    return ((x + m - 1) // m) * m


def _lstm_kernel(x_ref, wih_ref, whh_ref, b_ref, h_out_ref, xg_ref, *,
                 seq_len, chunk_b):
    # x_ref:     (1, T*BC, Ep)  bf16  flat time-major inputs for this batch chunk
    # wih_ref:   (Ep, 4*Hp)     bf16  input->gates weight (gate order i,f,g,o)
    # whh_ref:   (Hp, 4*Hp)     bf16  hidden->gates weight
    # b_ref:     (1, 4*Hp)      f32   b_ih + b_hh
    # h_out_ref: (1, T*BC, Hp)  bf16  flat time-major hidden states
    # xg_ref:    (T*BC, 4*Hp)   f32   VMEM scratch: precomputed x-part of gates
    Hp = whh_ref.shape[0]
    BC = chunk_b

    # One big MXU dot for the input-to-hidden part of every timestep; bias is
    # folded in here so the per-step critical path is just h @ W_hh + gate math.
    xg_ref[...] = (jnp.dot(x_ref[0], wih_ref[...],
                           preferred_element_type=jnp.float32) + b_ref[...])

    whh = whh_ref[...]                            # loaded once, reused every step
    h = jnp.zeros((BC, Hp), jnp.float32)
    c = jnp.zeros((BC, Hp), jnp.float32)

    # Fully-unrolled recurrence (T is small and static).  One small bf16 MXU dot
    # per step; gate nonlinearities / cell state stay in f32.
    # TODO(synk): for long sequences, tile a grid axis over time chunks and carry
    # h/c in VMEM scratch instead of fully unrolling.
    for t in range(seq_len):
        lo, hi = t * BC, (t + 1) * BC             # static, 8-row aligned slices
        gates = xg_ref[lo:hi, :] + jnp.dot(h.astype(jnp.bfloat16), whh,
                                           preferred_element_type=jnp.float32)
        i_g = jax.nn.sigmoid(gates[:, 0 * Hp:1 * Hp])
        f_g = jax.nn.sigmoid(gates[:, 1 * Hp:2 * Hp])
        g_g = jnp.tanh(gates[:, 2 * Hp:3 * Hp])
        o_g = jax.nn.sigmoid(gates[:, 3 * Hp:4 * Hp])
        c = f_g * c + i_g * g_g
        h = o_g * jnp.tanh(c)
        h_out_ref[0, lo:hi, :] = h.astype(h_out_ref.dtype)   # dense (BC, Hp) slab


def _fc_kernel(h_ref, w_ref, b_ref, out_ref):
    # h_ref: (tile_m, Hp) bf16; w_ref: (Hp, Vt) bf16; b_ref: (1, Vt) f32
    # out_ref: (tile_m, Vt) f32  -- dense, lane/sublane-aligned output block.
    out_ref[...] = (jnp.dot(h_ref[...], w_ref[...],
                            preferred_element_type=jnp.float32)
                    + b_ref[...]).astype(out_ref.dtype)


def decoder_rnn_forward(features, captions, params, *, vocab_tile=2048):
    """features: (B, E) f32; captions: (B, Tcap) int32.  Returns (B, Tcap, V) f32."""
    embed_tbl = params["embed"]          # (V, E)
    w_ih = params["w_ih"]                # (E, 4H)  (transposed vs torch: x @ W)
    w_hh = params["w_hh"]                # (H, 4H)
    b = params["b"]                      # (1, 4H)  (= b_ih + b_hh)
    w_fc = params["w_fc"]                # (H, V)
    b_fc = params["b_fc"]                # (1, V)

    B, E = features.shape
    H = w_hh.shape[0]
    V = w_fc.shape[1]
    T = captions.shape[1]                # LSTM seq len = 1 + (Tcap - 1)

    Ep = _round_up(E, 128)               # lane granularity
    Hp = _round_up(H, 128)

    # Batch chunking: >=2 chunks at larger batch so the LSTM's "parallel" grid
    # axis can be split across v7x's two TensorCores (1 chunk at toy sizes).
    if B >= 16:
        num_chunks = 2
        BC = _round_up((B + num_chunks - 1) // num_chunks, 8)
    else:
        num_chunks = 1
        BC = _round_up(B, 8)
    Bp = num_chunks * BC

    # ---- glue: embedding gather + image-feature concat, built time-major ----
    emb_tm = jnp.take(embed_tbl, captions[:, :-1].T, axis=0)          # (T-1, B, E)
    x_tm = jnp.concatenate([features[None, :, :], emb_tm], axis=0)    # (T, B, E)
    x_p = jnp.pad(x_tm, ((0, 0), (0, Bp - B), (0, Ep - E))).astype(jnp.bfloat16)
    # chunked, flat time-major per chunk: (num_chunks, T*BC, Ep)
    x_ck = (x_p.reshape(T, num_chunks, BC, Ep)
               .transpose(1, 0, 2, 3)
               .reshape(num_chunks, T * BC, Ep))

    # ---- weights: pad each gate block to Hp lanes ----------------------------
    def pad_gate_cols(w, rows_p):
        rows = w.shape[0]
        w4 = w.reshape(rows, 4, H)
        w4 = jnp.pad(w4, ((0, rows_p - rows), (0, 0), (0, Hp - H)))
        return w4.reshape(rows_p, 4 * Hp)

    w_ih_p = pad_gate_cols(w_ih, Ep).astype(jnp.bfloat16)
    w_hh_p = pad_gate_cols(w_hh, Hp).astype(jnp.bfloat16)
    b_p = jnp.pad(b.reshape(1, 4, H), ((0, 0), (0, 0), (0, Hp - H))
                  ).reshape(1, 4 * Hp).astype(jnp.float32)

    # ---- kernel 1: recurrent LSTM, one grid step per independent batch chunk -
    lstm_kernel = functools.partial(_lstm_kernel, seq_len=T, chunk_b=BC)
    h_ck = pl.pallas_call(
        lstm_kernel,
        out_shape=jax.ShapeDtypeStruct((num_chunks, T * BC, Hp), jnp.bfloat16),
        grid=(num_chunks,),
        in_specs=[
            pl.BlockSpec((1, T * BC, Ep), lambda i: (i, 0, 0)),
            pl.BlockSpec((Ep, 4 * Hp), lambda i: (0, 0)),     # fetched once
            pl.BlockSpec((Hp, 4 * Hp), lambda i: (0, 0)),     # fetched once
            pl.BlockSpec((1, 4 * Hp), lambda i: (0, 0)),
        ],
        out_specs=pl.BlockSpec((1, T * BC, Hp), lambda i: (i, 0, 0)),
        scratch_shapes=[pltpu.VMEM((T * BC, 4 * Hp), jnp.float32)],
        compiler_params=pltpu.CompilerParams(
            dimension_semantics=("parallel",)),
    )(x_ck, w_ih_p, w_hh_p, b_p)

    # ---- small wrapper relayout: batch-first, flat (Bp*T, Hp) M axis ---------
    h_seq = (h_ck.reshape(num_chunks, T, BC, Hp)
                 .transpose(0, 2, 1, 3)
                 .reshape(Bp * T, Hp))

    M = Bp * T                                    # multiple of 8
    tile_m = min(256, M)
    Mp = _round_up(M, tile_m)
    h_flat = jnp.pad(h_seq, ((0, Mp - M), (0, 0)))

    # ---- vocab tile: pad V up to a multiple of the tile (robust selection) ---
    Vt = max(128, (vocab_tile // 128) * 128)      # lane-dense, v7x-VMEM-safe default
    Vt = min(Vt, _round_up(V, 128))
    Vp = _round_up(V, Vt)
    w_fc_p = jnp.pad(w_fc, ((0, Hp - H), (0, Vp - V))).astype(jnp.bfloat16)
    b_fc_p = jnp.pad(b_fc, ((0, 0), (0, Vp - V))).astype(jnp.float32)

    # ---- kernel 2: vocab projection.  Vocab tile is the OUTER grid axis so the
    # w_fc block index is constant across the inner M axis and its HBM fetch is
    # skipped between steps (weight reused across all M tiles). -----------------
    logits_p = pl.pallas_call(
        _fc_kernel,
        out_shape=jax.ShapeDtypeStruct((Mp, Vp), jnp.float32),
        grid=(Vp // Vt, Mp // tile_m),
        in_specs=[
            pl.BlockSpec((tile_m, Hp), lambda vi, mi: (mi, 0)),
            pl.BlockSpec((Hp, Vt), lambda vi, mi: (0, vi)),
            pl.BlockSpec((1, Vt), lambda vi, mi: (0, vi)),
        ],
        out_specs=pl.BlockSpec((tile_m, Vt), lambda vi, mi: (mi, vi)),
        compiler_params=pltpu.CompilerParams(
            dimension_semantics=("parallel", "parallel")),
    )(h_flat, w_fc_p, b_fc_p)

    # batch-first (B, T, V); all padding sliced off, no large HBM transpose.
    return logits_p[:M].reshape(Bp, T, Vp)[:B, :, :V]


def _init_params(key, embed_size, hidden_size, vocab_size):
    ks = jax.random.split(key, 7)
    scale = 0.1
    return {
        "embed": scale * jax.random.normal(ks[0], (vocab_size, embed_size), jnp.float32),
        # stored transposed relative to torch (in_features, 4H) so kernel does x @ W
        "w_ih": scale * jax.random.normal(ks[1], (embed_size, 4 * hidden_size), jnp.float32),
        "w_hh": scale * jax.random.normal(ks[2], (hidden_size, 4 * hidden_size), jnp.float32),
        "b": (scale * jax.random.normal(ks[3], (1, 4 * hidden_size), jnp.float32)
              + scale * jax.random.normal(ks[4], (1, 4 * hidden_size), jnp.float32)),
        "w_fc": scale * jax.random.normal(ks[5], (hidden_size, vocab_size), jnp.float32),
        "b_fc": scale * jax.random.normal(ks[6], (1, vocab_size), jnp.float32),
    }


def _reference_forward(features, captions, params):
    """Pure-JAX reference mirroring the kernel's bf16 cast points (f32 math)."""
    bf = lambda a: a.astype(jnp.bfloat16).astype(jnp.float32)
    emb = jnp.take(params["embed"], captions[:, :-1], axis=0)
    x = bf(jnp.concatenate([features[:, None, :], emb], axis=1))   # (B, T, E)
    w_ih = bf(params["w_ih"]); w_hh = bf(params["w_hh"]); b = params["b"]
    w_fc = bf(params["w_fc"]); b_fc = params["b_fc"]
    B, T, _ = x.shape
    H = params["w_hh"].shape[0]
    h = jnp.zeros((B, H), jnp.float32)
    c = jnp.zeros((B, H), jnp.float32)
    outs = []
    for t in range(T):
        gates = x[:, t, :] @ w_ih + b + bf(h) @ w_hh
        i = jax.nn.sigmoid(gates[:, 0:H])
        f = jax.nn.sigmoid(gates[:, H:2 * H])
        g = jnp.tanh(gates[:, 2 * H:3 * H])
        o = jax.nn.sigmoid(gates[:, 3 * H:4 * H])
        c = f * c + i * g
        h = o * jnp.tanh(c)
        outs.append(bf(h) @ w_fc + b_fc)
    return jnp.stack(outs, axis=1)


if __name__ == "__main__":
    B = 2            # batch
    T_CAP = 8        # caption length (LSTM sequence length = 8)
    E = 32           # embed_size
    H = 32           # hidden_size
    V = 128          # vocab_size

    key = jax.random.PRNGKey(0)
    k_feat, k_cap, k_par = jax.random.split(key, 3)

    features = jax.random.normal(k_feat, (B, E), jnp.float32)
    captions = jax.random.randint(k_cap, (B, T_CAP), 0, V, jnp.int32)
    params = _init_params(k_par, E, H, V)

    out = jax.block_until_ready(decoder_rnn_forward(features, captions, params))
    ref = _reference_forward(features, captions, params)

    assert out.shape == (B, T_CAP, V), out.shape
    max_err = float(jnp.max(jnp.abs(out - ref)))
    assert jnp.allclose(out, ref, atol=1e-2, rtol=1e-2), f"mismatch, max_err={max_err}"

    print("KERNEL_OK")
</pallas_src>

<mosaic_0001>
module attributes {stable_mosaic.version = 11 : i64} {
  func.func @_lstm_kernel(%arg0: i32, %arg1: memref<1x64x128xbf16, #tpu.memory_space<vmem>>, %arg2: memref<128x512xbf16, #tpu.memory_space<vmem>>, %arg3: memref<128x512xbf16, #tpu.memory_space<vmem>>, %arg4: memref<1x512xf32, #tpu.memory_space<vmem>>, %arg5: memref<1x64x128xbf16, #tpu.memory_space<vmem>>, %arg6: memref<64x512xf32, #tpu.memory_space<vmem>>) attributes {dimension_semantics = [#tpu.dimension_semantics<parallel>], iteration_bounds = array<i64: 1>, scalar_prefetch = 0 : i64, scratch_operands = 1 : i64, tpu.core_type = #tpu.core_type<tc>, window_params = [{transform_indices = @transform_0, window_bounds = array<i64: 1, 64, 128>}, {pipeline_mode = #tpu.pipeline_mode<synchronous>, transform_indices = @transform_1, window_bounds = array<i64: 128, 512>}, {pipeline_mode = #tpu.pipeline_mode<synchronous>, transform_indices = @transform_2, window_bounds = array<i64: 128, 512>}, {pipeline_mode = #tpu.pipeline_mode<synchronous>, transform_indices = @transform_3, window_bounds = array<i64: 1, 512>}, {transform_indices = @transform_4, window_bounds = array<i64: 1, 64, 128>}]} {
    %c0 = arith.constant 0 : index
    %c0_0 = arith.constant 0 : index
    %c0_1 = arith.constant 0 : index
    %0 = vector.load %arg1[%c0, %c0_0, %c0_1] : memref<1x64x128xbf16, #tpu.memory_space<vmem>>, vector<1x64x128xbf16>
    %1 = vector.shape_cast %0 : vector<1x64x128xbf16> to vector<64x128xbf16>
    %c0_2 = arith.constant 0 : index
    %c0_3 = arith.constant 0 : index
    %2 = vector.load %arg2[%c0_2, %c0_3] : memref<128x512xbf16, #tpu.memory_space<vmem>>, vector<128x512xbf16>
    %cst = arith.constant dense<0.000000e+00> : vector<64x512xf32>
    %3 = tpu.matmul %1, %2, %cst {dimension_numbers = #tpu.dot_dimension_numbers<[1], [0], [0], [1], [0, 0, 1, 1], [], []>} : vector<64x128xbf16>, vector<128x512xbf16>, vector<64x512xf32> -> vector<64x512xf32>
    %c0_4 = arith.constant 0 : index
    %c0_5 = arith.constant 0 : index
    %4 = vector.load %arg4[%c0_4, %c0_5] : memref<1x512xf32, #tpu.memory_space<vmem>>, vector<1x512xf32>
    %5 = vector.broadcast %4 : vector<1x512xf32> to vector<64x512xf32>
    %6 = arith.addf %3, %5 : vector<64x512xf32>
    %c0_6 = arith.constant 0 : index
    %c0_7 = arith.constant 0 : index
    %7 = vector.load %arg6[%c0_6, %c0_7] : memref<64x512xf32, #tpu.memory_space<vmem>>, vector<64x512xf32>
    tpu.vector_store %arg6[%c0_6, %c0_7], %6 {strides = array<i32>} : memref<64x512xf32, #tpu.memory_space<vmem>>, vector<64x512xf32>,
    %c0_8 = arith.constant 0 : index
    %c0_9 = arith.constant 0 : index
    %8 = vector.load %arg3[%c0_8, %c0_9] : memref<128x512xbf16, #tpu.memory_space<vmem>>, vector<128x512xbf16>
    %cst_10 = arith.constant 0.000000e+00 : f32
    %9 = vector.broadcast %cst_10 : f32 to vector<8x128xf32>
    %cst_11 = arith.constant 0.000000e+00 : f32
    %10 = vector.broadcast %cst_11 : f32 to vector<8x128xf32>
    %c0_12 = arith.constant 0 : index
    %c0_13 = arith.constant 0 : index
    %11 = vector.load %arg6[%c0_12, %c0_13] : memref<64x512xf32, #tpu.memory_space<vmem>>, vector<8x512xf32>
    %12 = arith.truncf %9 : vector<8x128xf32> to vector<8x128xbf16>
    %cst_14 = arith.constant dense<0.000000e+00> : vector<8x512xf32>
    %13 = tpu.matmul %12, %8, %cst_14 {dimension_numbers = #tpu.dot_dimension_numbers<[1], [0], [0], [1], [0, 0, 1, 1], [], []>} : vector<8x128xbf16>, vector<128x512xbf16>, vector<8x512xf32> -> vector<8x512xf32>
    %14 = arith.addf %11, %13 : vector<8x512xf32>
    %15 = vector.extract_strided_slice %14 {offsets = [0, 0], sizes = [8, 128], strides = [1, 1]} : vector<8x512xf32> to vector<8x128xf32>
    %16 = arith.negf %15 : vector<8x128xf32>
    %17 = math.exp %16 : vector<8x128xf32>
    %cst_15 = arith.constant 1.000000e+00 : f32
    %18 = vector.broadcast %cst_15 : f32 to vector<8x128xf32>
    %19 = arith.addf %18, %17 : vector<8x128xf32>
    %20 = arith.divf %18, %19 : vector<8x128xf32>
    %21 = vector.extract_strided_slice %14 {offsets = [0, 128], sizes = [8, 128], strides = [1, 1]} : vector<8x512xf32> to vector<8x128xf32>
    %22 = arith.negf %21 : vector<8x128xf32>
    %23 = math.exp %22 : vector<8x128xf32>
    %cst_16 = arith.constant 1.000000e+00 : f32
    %24 = vector.broadcast %cst_16 : f32 to vector<8x128xf32>
    %25 = arith.addf %24, %23 : vector<8x128xf32>
    %26 = arith.divf %24, %25 : vector<8x128xf32>
    %27 = vector.extract_strided_slice %14 {offsets = [0, 256], sizes = [8, 128], strides = [1, 1]} : vector<8x512xf32> to vector<8x128xf32>
    %28 = math.tanh %27 : vector<8x128xf32>
    %29 = vector.extract_strided_slice %14 {offsets = [0, 384], sizes = [8, 128], strides = [1, 1]} : vector<8x512xf32> to vector<8x128xf32>
    %30 = arith.negf %29 : vector<8x128xf32>
    %31 = math.exp %30 : vector<8x128xf32>
    %cst_17 = arith.constant 1.000000e+00 : f32
    %32 = vector.broadcast %cst_17 : f32 to vector<8x128xf32>
    %33 = arith.addf %32, %31 : vector<8x128xf32>
    %34 = arith.divf %32, %33 : vector<8x128xf32>
    %35 = arith.mulf %26, %10 : vector<8x128xf32>
    %36 = arith.mulf %20, %28 : vector<8x128xf32>
    %37 = arith.addf %35, %36 : vector<8x128xf32>
    %38 = math.tanh %37 : vector<8x128xf32>
    %39 = arith.mulf %34, %38 : vector<8x128xf32>
    %40 = arith.truncf %39 : vector<8x128xf32> to vector<8x128xbf16>
    %c0_18 = arith.constant 0 : index
    %c0_19 = arith.constant 0 : index
    %c0_20 = arith.constant 0 : index
    %41 = vector.load %arg5[%c0_18, %c0_19, %c0_20] : memref<1x64x128xbf16, #tpu.memory_space<vmem>>, vector<1x8x128xbf16>
    %42 = vector.shape_cast %41 : vector<1x8x128xbf16> to vector<8x128xbf16>
    %43 = vector.shape_cast %40 : vector<8x128xbf16> to vector<1x8x128xbf16>
    tpu.vector_store %arg5[%c0_18, %c0_19, %c0_20], %43 {strides = array<i32>} : memref<1x64x128xbf16, #tpu.memory_space<vmem>>, vector<1x8x128xbf16>,
    %c8 = arith.constant 8 : index
    %c0_21 = arith.constant 0 : index
    %44 = vector.load %arg6[%c8, %c0_21] : memref<64x512xf32, #tpu.memory_space<vmem>>, vector<8x512xf32>
    %45 = arith.truncf %39 : vector<8x128xf32> to vector<8x128xbf16>
    %cst_22 = arith.constant dense<0.000000e+00> : vector<8x512xf32>
    %46 = tpu.matmul %45, %8, %cst_22 {dimension_numbers = #tpu.dot_dimension_numbers<[1], [0], [0], [1], [0, 0, 1, 1], [], []>} : vector<8x128xbf16>, vector<128x512xbf16>, vector<8x512xf32> -> vector<8x512xf32>
    %47 = arith.addf %44, %46 : vector<8x512xf32>
    %48 = vector.extract_strided_slice %47 {offsets = [0, 0], sizes = [8, 128], strides = [1, 1]} : vector<8x512xf32> to vector<8x128xf32>
    %49 = arith.negf %48 : vector<8x128xf32>
    %50 = math.exp %49 : vector<8x128xf32>
    %cst_23 = arith.constant 1.000000e+00 : f32
    %51 = vector.broadcast %cst_23 : f32 to vector<8x128xf32>
    %52 = arith.addf %51, %50 : vector<8x128xf32>
    %53 = arith.divf %51, %52 : vector<8x128xf32>
    %54 = vector.extract_strided_slice %47 {offsets = [0, 128], sizes = [8, 128], strides = [1, 1]} : vector<8x512xf32> to vector<8x128xf32>
    %55 = arith.negf %54 : vector<8x128xf32>
    %56 = math.exp %55 : vector<8x128xf32>
    %cst_24 = arith.constant 1.000000e+00 : f32
    %57 = vector.broadcast %cst_24 : f32 to vector<8x128xf32>
    %58 = arith.addf %57, %56 : vector<8x128xf32>
    %59 = arith.divf %57, %58 : vector<8x128xf32>
    %60 = vector.extract_strided_slice %47 {offsets = [0, 256], sizes = [8, 128], strides = [1, 1]} : vector<8x512xf32> to vector<8x128xf32>
    %61 = math.tanh %60 : vector<8x128xf32>
    %62 = vector.extract_strided_slice %47 {offsets = [0, 384], sizes = [8, 128], strides = [1, 1]} : vector<8x512xf32> to vector<8x128xf32>
    %63 = arith.negf %62 : vector<8x128xf32>
    %64 = math.exp %63 : vector<8x128xf32>
    %cst_25 = arith.constant 1.000000e+00 : f32
    %65 = vector.broadcast %cst_25 : f32 to vector<8x128xf32>
    %66 = arith.addf %65, %64 : vector<8x128xf32>
    %67 = arith.divf %65, %66 : vector<8x128xf32>
    %68 = arith.mulf %59, %37 : vector<8x128xf32>
    %69 = arith.mulf %53, %61 : vector<8x128xf32>
    %70 = arith.addf %68, %69 : vector<8x128xf32>
    %71 = math.tanh %70 : vector<8x128xf32>
    %72 = arith.mulf %67, %71 : vector<8x128xf32>
    %73 = arith.truncf %72 : vector<8x128xf32> to vector<8x128xbf16>
    %c0_26 = arith.constant 0 : index
    %c8_27 = arith.constant 8 : index
    %c0_28 = arith.constant 0 : index
    %74 = vector.load %arg5[%c0_26, %c8_27, %c0_28] : memref<1x64x128xbf16, #tpu.memory_space<vmem>>, vector<1x8x128xbf16>
    %75 = vector.shape_cast %74 : vector<1x8x128xbf16> to vector<8x128xbf16>
    %76 = vector.shape_cast %73 : vector<8x128xbf16> to vector<1x8x128xbf16>
    tpu.vector_store %arg5[%c0_26, %c8_27, %c0_28], %76 {strides = array<i32>} : memref<1x64x128xbf16, #tpu.memory_space<vmem>>, vector<1x8x128xbf16>,
    %c16 = arith.constant 16 : index
    %c0_29 = arith.constant 0 : index
    %77 = vector.load %arg6[%c16, %c0_29] : memref<64x512xf32, #tpu.memory_space<vmem>>, vector<8x512xf32>
    %78 = arith.truncf %72 : vector<8x128xf32> to vector<8x128xbf16>
    %cst_30 = arith.constant dense<0.000000e+00> : vector<8x512xf32>
    %79 = tpu.matmul %78, %8, %cst_30 {dimension_numbers = #tpu.dot_dimension_numbers<[1], [0], [0], [1], [0, 0, 1, 1], [], []>} : vector<8x128xbf16>, vector<128x512xbf16>, vector<8x512xf32> -> vector<8x512xf32>
    %80 = arith.addf %77, %79 : vector<8x512xf32>
    %81 = vector.extract_strided_slice %80 {offsets = [0, 0], sizes = [8, 128], strides = [1, 1]} : vector<8x512xf32> to vector<8x128xf32>
    %82 = arith.negf %81 : vector<8x128xf32>
    %83 = math.exp %82 : vector<8x128xf32>
    %cst_31 = arith.constant 1.000000e+00 : f32
    %84 = vector.broadcast %cst_31 : f32 to vector<8x128xf32>
    %85 = arith.addf %84, %83 : vector<8x128xf32>
    %86 = arith.divf %84, %85 : vector<8x128xf32>
    %87 = vector.extract_strided_slice %80 {offsets = [0, 128], sizes = [8, 128], strides = [1, 1]} : vector<8x512xf32> to vector<8x128xf32>
    %88 = arith.negf %87 : vector<8x128xf32>
    %89 = math.exp %88 : vector<8x128xf32>
    %cst_32 = arith.constant 1.000000e+00 : f32
    %90 = vector.broadcast %cst_32 : f32 to vector<8x128xf32>
    %91 = arith.addf %90, %89 : vector<8x128xf32>
    %92 = arith.divf %90, %91 : vector<8x128xf32>
    %93 = vector.extract_strided_slice %80 {offsets = [0, 256], sizes = [8, 128], strides = [1, 1]} : vector<8x512xf32> to vector<8x128xf32>
    %94 = math.tanh %93 : vector<8x128xf32>
    %95 = vector.extract_strided_slice %80 {offsets = [0, 384], sizes = [8, 128], strides = [1, 1]} : vector<8x512xf32> to vector<8x128xf32>
    %96 = arith.negf %95 : vector<8x128xf32>
    %97 = math.exp %96 : vector<8x128xf32>
    %cst_33 = arith.constant 1.000000e+00 : f32
    %98 = vector.broadcast %cst_33 : f32 to vector<8x128xf32>
    %99 = arith.addf %98, %97 : vector<8x128xf32>
    %100 = arith.divf %98, %99 : vector<8x128xf32>
    %101 = arith.mulf %92, %70 : vector<8x128xf32>
    %102 = arith.mulf %86, %94 : vector<8x128xf32>
    %103 = arith.addf %101, %102 : vector<8x128xf32>
    %104 = math.tanh %103 : vector<8x128xf32>
    %105 = arith.mulf %100, %104 : vector<8x128xf32>
    %106 = arith.truncf %105 : vector<8x128xf32> to vector<8x128xbf16>
    %c0_34 = arith.constant 0 : index
    %c16_35 = arith.constant 16 : index
    %c0_36 = arith.constant 0 : index
    %107 = vector.load %arg5[%c0_34, %c16_35, %c0_36] : memref<1x64x128xbf16, #tpu.memory_space<vmem>>, vector<1x8x128xbf16>
    %108 = vector.shape_cast %107 : vector<1x8x128xbf16> to vector<8x128xbf16>
    %109 = vector.shape_cast %106 : vector<8x128xbf16> to vector<1x8x128xbf16>
    tpu.vector_store %arg5[%c0_34, %c16_35, %c0_36], %109 {strides = array<i32>} : memref<1x64x128xbf16, #tpu.memory_space<vmem>>, vector<1x8x128xbf16>,
    %c24 = arith.constant 24 : index
    %c0_37 = arith.constant 0 : index
    %110 = vector.load %arg6[%c24, %c0_37] : memref<64x512xf32, #tpu.memory_space<vmem>>, vector<8x512xf32>
    %111 = arith.truncf %105 : vector<8x128xf32> to vector<8x128xbf16>
    %cst_38 = arith.constant dense<0.000000e+00> : vector<8x512xf32>
    %112 = tpu.matmul %111, %8, %cst_38 {dimension_numbers = #tpu.dot_dimension_numbers<[1], [0], [0], [1], [0, 0, 1, 1], [], []>} : vector<8x128xbf16>, vector<128x512xbf16>, vector<8x512xf32> -> vector<8x512xf32>
    %113 = arith.addf %110, %112 : vector<8x512xf32>
    %114 = vector.extract_strided_slice %113 {offsets = [0, 0], sizes = [8, 128], strides = [1, 1]} : vector<8x512xf32> to vector<8x128xf32>
    %115 = arith.negf %114 : vector<8x128xf32>
    %116 = math.exp %115 : vector<8x128xf32>
    %cst_39 = arith.constant 1.000000e+00 : f32
    %117 = vector.broadcast %cst_39 : f32 to vector<8x128xf32>
    %118 = arith.addf %117, %116 : vector<8x128xf32>
    %119 = arith.divf %117, %118 : vector<8x128xf32>
    %120 = vector.extract_strided_slice %113 {offsets = [0, 128], sizes = [8, 128], strides = [1, 1]} : vector<8x512xf32> to vector<8x128xf32>
    %121 = arith.negf %120 : vector<8x128xf32>
    %122 = math.exp %121 : vector<8x128xf32>
    %cst_40 = arith.constant 1.000000e+00 : f32
    %123 = vector.broadcast %cst_40 : f32 to vector<8x128xf32>
    %124 = arith.addf %123, %122 : vector<8x128xf32>
    %125 = arith.divf %123, %124 : vector<8x128xf32>
    %126 = vector.extract_strided_slice %113 {offsets = [0, 256], sizes = [8, 128], strides = [1, 1]} : vector<8x512xf32> to vector<8x128xf32>
    %127 = math.tanh %126 : vector<8x128xf32>
    %128 = vector.extract_strided_slice %113 {offsets = [0, 384], sizes = [8, 128], strides = [1, 1]} : vector<8x512xf32> to vector<8x128xf32>
    %129 = arith.negf %128 : vector<8x128xf32>
    %130 = math.exp %129 : vector<8x128xf32>
    %cst_41 = arith.constant 1.000000e+00 : f32
    %131 = vector.broadcast %cst_41 : f32 to vector<8x128xf32>
    %132 = arith.addf %131, %130 : vector<8x128xf32>
    %133 = arith.divf %131, %132 : vector<8x128xf32>
    %134 = arith.mulf %125, %103 : vector<8x128xf32>
    %135 = arith.mulf %119, %127 : vector<8x128xf32>
    %136 = arith.addf %134, %135 : vector<8x128xf32>
    %137 = math.tanh %136 : vector<8x128xf32>
    %138 = arith.mulf %133, %137 : vector<8x128xf32>
    %139 = arith.truncf %138 : vector<8x128xf32> to vector<8x128xbf16>
    %c0_42 = arith.constant 0 : index
    %c24_43 = arith.constant 24 : index
    %c0_44 = arith.constant 0 : index
    %140 = vector.load %arg5[%c0_42, %c24_43, %c0_44] : memref<1x64x128xbf16, #tpu.memory_space<vmem>>, vector<1x8x128xbf16>
    %141 = vector.shape_cast %140 : vector<1x8x128xbf16> to vector<8x128xbf16>
    %142 = vector.shape_cast %139 : vector<8x128xbf16> to vector<1x8x128xbf16>
    tpu.vector_store %arg5[%c0_42, %c24_43, %c0_44], %142 {strides = array<i32>} : memref<1x64x128xbf16, #tpu.memory_space<vmem>>, vector<1x8x128xbf16>,
    %c32 = arith.constant 32 : index
    %c0_45 = arith.constant 0 : index
    %143 = vector.load %arg6[%c32, %c0_45] : memref<64x512xf32, #tpu.memory_space<vmem>>, vector<8x512xf32>
    %144 = arith.truncf %138 : vector<8x128xf32> to vector<8x128xbf16>
    %cst_46 = arith.constant dense<0.000000e+00> : vector<8x512xf32>
    %145 = tpu.matmul %144, %8, %cst_46 {dimension_numbers = #tpu.dot_dimension_numbers<[1], [0], [0], [1], [0, 0, 1, 1], [], []>} : vector<8x128xbf16>, vector<128x512xbf16>, vector<8x512xf32> -> vector<8x512xf32>
    %146 = arith.addf %143, %145 : vector<8x512xf32>
    %147 = vector.extract_strided_slice %146 {offsets = [0, 0], sizes = [8, 128], strides = [1, 1]} : vector<8x512xf32> to vector<8x128xf32>
    %148 = arith.negf %147 : vector<8x128xf32>
    %149 = math.exp %148 : vector<8x128xf32>
    %cst_47 = arith.constant 1.000000e+00 : f32
    %150 = vector.broadcast %cst_47 : f32 to vector<8x128xf32>
    %151 = arith.addf %150, %149 : vector<8x128xf32>
    %152 = arith.divf %150, %151 : vector<8x128xf32>
    %153 = vector.extract_strided_slice %146 {offsets = [0, 128], sizes = [8, 128], strides = [1, 1]} : vector<8x512xf32> to vector<8x128xf32>
    %154 = arith.negf %153 : vector<8x128xf32>
    %155 = math.exp %154 : vector<8x128xf32>
    %cst_48 = arith.constant 1.000000e+00 : f32
    %156 = vector.broadcast %cst_48 : f32 to vector<8x128xf32>
    %157 = arith.addf %156, %155 : vector<8x128xf32>
    %158 = arith.divf %156, %157 : vector<8x128xf32>
    %159 = vector.extract_strided_slice %146 {offsets = [0, 256], sizes = [8, 128], strides = [1, 1]} : vector<8x512xf32> to vector<8x128xf32>
    %160 = math.tanh %159 : vector<8x128xf32>
    %161 = vector.extract_strided_slice %146 {offsets = [0, 384], sizes = [8, 128], strides = [1, 1]} : vector<8x512xf32> to vector<8x128xf32>
    %162 = arith.negf %161 : vector<8x128xf32>
    %163 = math.exp %162 : vector<8x128xf32>
    %cst_49 = arith.constant 1.000000e+00 : f32
    %164 = vector.broadcast %cst_49 : f32 to vector<8x128xf32>
    %165 = arith.addf %164, %163 : vector<8x128xf32>
    %166 = arith.divf %164, %165 : vector<8x128xf32>
    %167 = arith.mulf %158, %136 : vector<8x128xf32>
    %168 = arith.mulf %152, %160 : vector<8x128xf32>
    %169 = arith.addf %167, %168 : vector<8x128xf32>
    %170 = math.tanh %169 : vector<8x128xf32>
    %171 = arith.mulf %166, %170 : vector<8x128xf32>
    %172 = arith.truncf %171 : vector<8x128xf32> to vector<8x128xbf16>
    %c0_50 = arith.constant 0 : index
    %c32_51 = arith.constant 32 : index
    %c0_52 = arith.constant 0 : index
    %173 = vector.load %arg5[%c0_50, %c32_51, %c0_52] : memref<1x64x128xbf16, #tpu.memory_space<vmem>>, vector<1x8x128xbf16>
    %174 = vector.shape_cast %173 : vector<1x8x128xbf16> to vector<8x128xbf16>
    %175 = vector.shape_cast %172 : vector<8x128xbf16> to vector<1x8x128xbf16>
    tpu.vector_store %arg5[%c0_50, %c32_51, %c0_52], %175 {strides = array<i32>} : memref<1x64x128xbf16, #tpu.memory_space<vmem>>, vector<1x8x128xbf16>,
    %c40 = arith.constant 40 : index
    %c0_53 = arith.constant 0 : index
    %176 = vector.load %arg6[%c40, %c0_53] : memref<64x512xf32, #tpu.memory_space<vmem>>, vector<8x512xf32>
    %177 = arith.truncf %171 : vector<8x128xf32> to vector<8x128xbf16>
    %cst_54 = arith.constant dense<0.000000e+00> : vector<8x512xf32>
    %178 = tpu.matmul %177, %8, %cst_54 {dimension_numbers = #tpu.dot_dimension_numbers<[1], [0], [0], [1], [0, 0, 1, 1], [], []>} : vector<8x128xbf16>, vector<128x512xbf16>, vector<8x512xf32> -> vector<8x512xf32>
    %179 = arith.addf %176, %178 : vector<8x512xf32>
    %180 = vector.extract_strided_slice %179 {offsets = [0, 0], sizes = [8, 128], strides = [1, 1]} : vector<8x512xf32> to vector<8x128xf32>
    %181 = arith.negf %180 : vector<8x128xf32>
    %182 = math.exp %181 : vector<8x128xf32>
    %cst_55 = arith.constant 1.000000e+00 : f32
    %183 = vector.broadcast %cst_55 : f32 to vector<8x128xf32>
    %184 = arith.addf %183, %182 : vector<8x128xf32>
    %185 = arith.divf %183, %184 : vector<8x128xf32>
    %186 = vector.extract_strided_slice %179 {offsets = [0, 128], sizes = [8, 128], strides = [1, 1]} : vector<8x512xf32> to vector<8x128xf32>
    %187 = arith.negf %186 : vector<8x128xf32>
    %188 = math.exp %187 : vector<8x128xf32>
    %cst_56 = arith.constant 1.000000e+00 : f32
    %189 = vector.broadcast %cst_56 : f32 to vector<8x128xf32>
    %190 = arith.addf %189, %188 : vector<8x128xf32>
    %191 = arith.divf %189, %190 : vector<8x128xf32>
    %192 = vector.extract_strided_slice %179 {offsets = [0, 256], sizes = [8, 128], strides = [1, 1]} : vector<8x512xf32> to vector<8x128xf32>
    %193 = math.tanh %192 : vector<8x128xf32>
    %194 = vector.extract_strided_slice %179 {offsets = [0, 384], sizes = [8, 128], strides = [1, 1]} : vector<8x512xf32> to vector<8x128xf32>
    %195 = arith.negf %194 : vector<8x128xf32>
    %196 = math.exp %195 : vector<8x128xf32>
    %cst_57 = arith.constant 1.000000e+00 : f32
    %197 = vector.broadcast %cst_57 : f32 to vector<8x128xf32>
    %198 = arith.addf %197, %196 : vector<8x128xf32>
    %199 = arith.divf %197, %198 : vector<8x128xf32>
    %200 = arith.mulf %191, %169 : vector<8x128xf32>
    %201 = arith.mulf %185, %193 : vector<8x128xf32>
    %202 = arith.addf %200, %201 : vector<8x128xf32>
    %203 = math.tanh %202 : vector<8x128xf32>
    %204 = arith.mulf %199, %203 : vector<8x128xf32>
    %205 = arith.truncf %204 : vector<8x128xf32> to vector<8x128xbf16>
    %c0_58 = arith.constant 0 : index
    %c40_59 = arith.constant 40 : index
    %c0_60 = arith.constant 0 : index
    %206 = vector.load %arg5[%c0_58, %c40_59, %c0_60] : memref<1x64x128xbf16, #tpu.memory_space<vmem>>, vector<1x8x128xbf16>
    %207 = vector.shape_cast %206 : vector<1x8x128xbf16> to vector<8x128xbf16>
    %208 = vector.shape_cast %205 : vector<8x128xbf16> to vector<1x8x128xbf16>
    tpu.vector_store %arg5[%c0_58, %c40_59, %c0_60], %208 {strides = array<i32>} : memref<1x64x128xbf16, #tpu.memory_space<vmem>>, vector<1x8x128xbf16>,
    %c48 = arith.constant 48 : index
    %c0_61 = arith.constant 0 : index
    %209 = vector.load %arg6[%c48, %c0_61] : memref<64x512xf32, #tpu.memory_space<vmem>>, vector<8x512xf32>
    %210 = arith.truncf %204 : vector<8x128xf32> to vector<8x128xbf16>
    %cst_62 = arith.constant dense<0.000000e+00> : vector<8x512xf32>
    %211 = tpu.matmul %210, %8, %cst_62 {dimension_numbers = #tpu.dot_dimension_numbers<[1], [0], [0], [1], [0, 0, 1, 1], [], []>} : vector<8x128xbf16>, vector<128x512xbf16>, vector<8x512xf32> -> vector<8x512xf32>
    %212 = arith.addf %209, %211 : vector<8x512xf32>
    %213 = vector.extract_strided_slice %212 {offsets = [0, 0], sizes = [8, 128], strides = [1, 1]} : vector<8x512xf32> to vector<8x128xf32>
    %214 = arith.negf %213 : vector<8x128xf32>
    %215 = math.exp %214 : vector<8x128xf32>
    %cst_63 = arith.constant 1.000000e+00 : f32
    %216 = vector.broadcast %cst_63 : f32 to vector<8x128xf32>
    %217 = arith.addf %216, %215 : vector<8x128xf32>
    %218 = arith.divf %216, %217 : vector<8x128xf32>
    %219 = vector.extract_strided_slice %212 {offsets = [0, 128], sizes = [8, 128], strides = [1, 1]} : vector<8x512xf32> to vector<8x128xf32>
    %220 = arith.negf %219 : vector<8x128xf32>
    %221 = math.exp %220 : vector<8x128xf32>
    %cst_64 = arith.constant 1.000000e+00 : f32
    %222 = vector.broadcast %cst_64 : f32 to vector<8x128xf32>
    %223 = arith.addf %222, %221 : vector<8x128xf32>
    %224 = arith.divf %222, %223 : vector<8x128xf32>
    %225 = vector.extract_strided_slice %212 {offsets = [0, 256], sizes = [8, 128], strides = [1, 1]} : vector<8x512xf32> to vector<8x128xf32>
    %226 = math.tanh %225 : vector<8x128xf32>
    %227 = vector.extract_strided_slice %212 {offsets = [0, 384], sizes = [8, 128], strides = [1, 1]} : vector<8x512xf32> to vector<8x128xf32>
    %228 = arith.negf %227 : vector<8x128xf32>
    %229 = math.exp %228 : vector<8x128xf32>
    %cst_65 = arith.constant 1.000000e+00 : f32
    %230 = vector.broadcast %cst_65 : f32 to vector<8x128xf32>
    %231 = arith.addf %230, %229 : vector<8x128xf32>
    %232 = arith.divf %230, %231 : vector<8x128xf32>
    %233 = arith.mulf %224, %202 : vector<8x128xf32>
    %234 = arith.mulf %218, %226 : vector<8x128xf32>
    %235 = arith.addf %233, %234 : vector<8x128xf32>
    %236 = math.tanh %235 : vector<8x128xf32>
    %237 = arith.mulf %232, %236 : vector<8x128xf32>
    %238 = arith.truncf %237 : vector<8x128xf32> to vector<8x128xbf16>
    %c0_66 = arith.constant 0 : index
    %c48_67 = arith.constant 48 : index
    %c0_68 = arith.constant 0 : index
    %239 = vector.load %arg5[%c0_66, %c48_67, %c0_68] : memref<1x64x128xbf16, #tpu.memory_space<vmem>>, vector<1x8x128xbf16>
    %240 = vector.shape_cast %239 : vector<1x8x128xbf16> to vector<8x128xbf16>
    %241 = vector.shape_cast %238 : vector<8x128xbf16> to vector<1x8x128xbf16>
    tpu.vector_store %arg5[%c0_66, %c48_67, %c0_68], %241 {strides = array<i32>} : memref<1x64x128xbf16, #tpu.memory_space<vmem>>, vector<1x8x128xbf16>,
    %c56 = arith.constant 56 : index
    %c0_69 = arith.constant 0 : index
    %242 = vector.load %arg6[%c56, %c0_69] : memref<64x512xf32, #tpu.memory_space<vmem>>, vector<8x512xf32>
    %243 = arith.truncf %237 : vector<8x128xf32> to vector<8x128xbf16>
    %cst_70 = arith.constant dense<0.000000e+00> : vector<8x512xf32>
    %244 = tpu.matmul %243, %8, %cst_70 {dimension_numbers = #tpu.dot_dimension_numbers<[1], [0], [0], [1], [0, 0, 1, 1], [], []>} : vector<8x128xbf16>, vector<128x512xbf16>, vector<8x512xf32> -> vector<8x512xf32>
    %245 = arith.addf %242, %244 : vector<8x512xf32>
    %246 = vector.extract_strided_slice %245 {offsets = [0, 0], sizes = [8, 128], strides = [1, 1]} : vector<8x512xf32> to vector<8x128xf32>
    %247 = arith.negf %246 : vector<8x128xf32>
    %248 = math.exp %247 : vector<8x128xf32>
    %cst_71 = arith.constant 1.000000e+00 : f32
    %249 = vector.broadcast %cst_71 : f32 to vector<8x128xf32>
    %250 = arith.addf %249, %248 : vector<8x128xf32>
    %251 = arith.divf %249, %250 : vector<8x128xf32>
    %252 = vector.extract_strided_slice %245 {offsets = [0, 128], sizes = [8, 128], strides = [1, 1]} : vector<8x512xf32> to vector<8x128xf32>
    %253 = arith.negf %252 : vector<8x128xf32>
    %254 = math.exp %253 : vector<8x128xf32>
    %cst_72 = arith.constant 1.000000e+00 : f32
    %255 = vector.broadcast %cst_72 : f32 to vector<8x128xf32>
    %256 = arith.addf %255, %254 : vector<8x128xf32>
    %257 = arith.divf %255, %256 : vector<8x128xf32>
    %258 = vector.extract_strided_slice %245 {offsets = [0, 256], sizes = [8, 128], strides = [1, 1]} : vector<8x512xf32> to vector<8x128xf32>
    %259 = math.tanh %258 : vector<8x128xf32>
    %260 = vector.extract_strided_slice %245 {offsets = [0, 384], sizes = [8, 128], strides = [1, 1]} : vector<8x512xf32> to vector<8x128xf32>
    %261 = arith.negf %260 : vector<8x128xf32>
    %262 = math.exp %261 : vector<8x128xf32>
    %cst_73 = arith.constant 1.000000e+00 : f32
    %263 = vector.broadcast %cst_73 : f32 to vector<8x128xf32>
    %264 = arith.addf %263, %262 : vector<8x128xf32>
    %265 = arith.divf %263, %264 : vector<8x128xf32>
    %266 = arith.mulf %257, %235 : vector<8x128xf32>
    %267 = arith.mulf %251, %259 : vector<8x128xf32>
    %268 = arith.addf %266, %267 : vector<8x128xf32>
    %269 = math.tanh %268 : vector<8x128xf32>
    %270 = arith.mulf %265, %269 : vector<8x128xf32>
    %271 = arith.truncf %270 : vector<8x128xf32> to vector<8x128xbf16>
    %c0_74 = arith.constant 0 : index
    %c56_75 = arith.constant 56 : index
    %c0_76 = arith.constant 0 : index
    %272 = vector.load %arg5[%c0_74, %c56_75, %c0_76] : memref<1x64x128xbf16, #tpu.memory_space<vmem>>, vector<1x8x128xbf16>
    %273 = vector.shape_cast %272 : vector<1x8x128xbf16> to vector<8x128xbf16>
    %274 = vector.shape_cast %271 : vector<8x128xbf16> to vector<1x8x128xbf16>
    tpu.vector_store %arg5[%c0_74, %c56_75, %c0_76], %274 {strides = array<i32>} : memref<1x64x128xbf16, #tpu.memory_space<vmem>>, vector<1x8x128xbf16>,
    return
  }
  func.func @transform_0(%arg0: i32) -> (i32, i32, i32) {
    %c0_i32 = arith.constant 0 : i32
    %c0_i32_0 = arith.constant 0 : i32
    %c0_i32_1 = arith.constant 0 : i32
    return %arg0, %c0_i32, %c0_i32_0 : i32, i32, i32
  }
  func.func @transform_1(%arg0: i32) -> (i32, i32) {
    %c0_i32 = arith.constant 0 : i32
    %c0_i32_0 = arith.constant 0 : i32
    %c0_i32_1 = arith.constant 0 : i32
    return %c0_i32, %c0_i32_0 : i32, i32
  }
  func.func @transform_2(%arg0: i32) -> (i32, i32) {
    %c0_i32 = arith.constant 0 : i32
    %c0_i32_0 = arith.constant 0 : i32
    %c0_i32_1 = arith.constant 0 : i32
    return %c0_i32, %c0_i32_0 : i32, i32
  }
  func.func @transform_3(%arg0: i32) -> (i32, i32) {
    %c0_i32 = arith.constant 0 : i32
    %c0_i32_0 = arith.constant 0 : i32
    %c0_i32_1 = arith.constant 0 : i32
    return %c0_i32, %c0_i32_0 : i32, i32
  }
  func.func @transform_4(%arg0: i32) -> (i32, i32, i32) {
    %c0_i32 = arith.constant 0 : i32
    %c0_i32_0 = arith.constant 0 : i32
    %c0_i32_1 = arith.constant 0 : i32
    return %arg0, %c0_i32, %c0_i32_0 : i32, i32, i32
  }
}

</mosaic_0001>

<bundles_post_ra>
// kernel: tpu_custom_call.1
= control target key start
LH: loop header
LB: loop body
LE: loop exit
PB: predicated region body
PF: predicated region fallthrough
CT: control target
= control target key end

     0   :  { %9 = vsyncpa [#allocation4], 0  ;;  %s2688_s0 = inlined_call_operand.hbm [shape: bf16[1,64,128], index: 0, kind: input, shape index: {}]   ;;  %s2689_s1 = inlined_call_operand.hbm [shape: bf16[128,512], index: 1, kind: input, shape index: {}]   ;;  %s2690_s2 = inlined_call_operand.hbm [shape: bf16[128,512], index: 2, kind: input, shape index: {}]   ;;  %s2691_s3 = inlined_call_operand.vmem [shape: f32[1,512], index: 3, kind: input, shape index: {}]   ;;  %s2692_s4 = inlined_call_operand.hbm [shape: bf16[1,64,128], index: 4, kind: output, shape index: {}]  }
   0x1   :  { %10 = vsyncpa [#allocation7], 0 }
   0x2   :  { %11 = vsyncpa [#allocation5], 0  ;;  %s2077_s15 = smov [#allocation6]   ;;  %s1983_s19 = scalar_lea.hbm %s2689_s1, 4096 }
   0x3   :  { %s29_s16 = sshll.u32 %s2077_s15, 4  ;;  %p1984_p0 = scmp.ne.s32.totalorder %s2689_s1, %s1983_s19  ;;  %s30_s16 = int_to_ptr.vmem [resolvable:$true] %s29_s16 }
   0x4   :  { %p1987_p1 = scmp.lt.u32.totalorder %s1983_s19, %s2689_s1 }
   0x6   :  { %p1989_p2 = pnand %p1987_p1, %p1984_p0 }
   0x8   :  { %1992 = shalt.err (!%p1989_p2)
}
   0x9   :  { %s1993_s24 = scalar_lea.vmem %s30_s16, 4096  ;;  %p1998_p4 = scmp.lt.s32.totalorder %s30_s16, %s30_s16 }
   0xa   :  { %p1994_p3 = scmp.ne.s32.totalorder %s30_s16, %s1993_s24  ;;  %p1999_p5 = scmp.lt.s32.totalorder %s1993_s24, %s1993_s24 }
   0xc   :  { %p2000_p6 = por %p1999_p5, %p1998_p4 }
   0xe   :  { %p2001_p7 = pnand %p2000_p6, %p1994_p3 }
  0x10   :  { %2004 = shalt.err (!%p2001_p7)
}
  0x11   :  { %s2078_s25 = smov 256   ;;  %s2079_s26 = smov 16  }
  0x12   :  { %35 = dma.hbm_to_vmem [thread:$0]  %s2689_s1, 4096, %s30_s16, [#allocation7], %s2078_s25, %s2078_s25, %s2079_s26  }
  0x13   :  { %s2080_s29 = smov [#allocation3]   ;;  %s2005_s7 = scalar_lea.hbm %s2688_s0, 512 }
  0x14   :  { %s17_s30 = sshll.u32 %s2080_s29, 4  ;;  %p2006_p8 = scmp.ne.s32.totalorder %s2688_s0, %s2005_s7  ;;  %s18_s30 = int_to_ptr.vmem [resolvable:$true] %s17_s30 }
  0x15   :  { %p2009_p9 = scmp.lt.u32.totalorder %s2005_s7, %s2688_s0 }
  0x17   :  { %p2011_p10 = pnand %p2009_p9, %p2006_p8 }
  0x19   :  { %2014 = shalt.err (!%p2011_p10)
}
  0x1a   :  { %s2015_s12 = scalar_lea.vmem %s18_s30, 512  ;;  %p2020_p12 = scmp.lt.s32.totalorder %s18_s30, %s18_s30 }
  0x1b   :  { %p2016_p11 = scmp.ne.s32.totalorder %s18_s30, %s2015_s12  ;;  %p2021_p13 = scmp.lt.s32.totalorder %s2015_s12, %s2015_s12 }
  0x1d   :  { %p2022_p0 = por %p2021_p13, %p2020_p12 }
  0x1f   :  { %p2023_p1 = pnand %p2022_p0, %p2016_p11 }
  0x21   :  { %2026 = shalt.err (!%p2023_p1)
}
  0x22   :  { %s2081_s1 = smov 64   ;;  %s2082_s13 = smov 4  }
  0x23   :  { %23 = dma.hbm_to_vmem [thread:$0]  %s2688_s0, 512, %s18_s30, [#allocation4], %s2081_s1, %s2081_s1, %s2082_s13  }
  0x24   :  { %s2083_s16 = smov [#allocation8]   ;;  %s2027_s20 = scalar_lea.hbm %s2690_s2, 4096 }
  0x25   :  { %s41_s17 = sshll.u32 %s2083_s16, 4  ;;  %p2028_p2 = scmp.ne.s32.totalorder %s2690_s2, %s2027_s20  ;;  %s42_s17 = int_to_ptr.vmem [resolvable:$true] %s41_s17 }
  0x26   :  { %p2031_p3 = scmp.lt.u32.totalorder %s2027_s20, %s2690_s2 }
  0x28   :  { %p2033_p4 = pnand %p2031_p3, %p2028_p2 }
  0x2a   :  { %2036 = shalt.err (!%p2033_p4)
}
  0x2b   :  { %s2037_s27 = scalar_lea.vmem %s42_s17, 4096  ;;  %p2042_p6 = scmp.lt.s32.totalorder %s42_s17, %s42_s17 }
  0x2c   :  { %p2038_p5 = scmp.ne.s32.totalorder %s42_s17, %s2037_s27  ;;  %p2043_p7 = scmp.lt.s32.totalorder %s2037_s27, %s2037_s27 }
  0x2e   :  { %p2044_p8 = por %p2043_p7, %p2042_p6 }
  0x30   :  { %p2045_p9 = pnand %p2044_p8, %p2038_p5 }
  0x32   :  { %2048 = shalt.err (!%p2045_p9)
}
  0x33   :  { %47 = dma.hbm_to_vmem [thread:$0]  %s2690_s2, 4096, %s42_s17, [#allocation7], %s2078_s25, %s2078_s25, %s2079_s26  }
  0x34   :  { %2071 = dma.done.wait [#allocation4], 512  }
  0x35   :  { %2072 = vsyncadd [#allocation4], 4294966784 }
  0x36   :  { %2073 = dma.done.wait [#allocation7], 8192  }
  0x37   :  { %2074 = vsyncadd [#allocation7], 4294959104  ;;  %v2693_v0 = vmov 0   ;;  %v1723_v1 = vld [vmem:[#allocation6 + $0x4] ss:$16 sps:$4 sm:$0xff]   ;;  %v1784_v44 = vld [vmem:[#allocation3 + $0x8] sm:$0xff]  }
  0x38   :  { %338 = vmatprep.mubr.bf16.mxu0 %v2693_v0  ;;  %411 = vmatprep.mubr.bf16.mxu1 %v2693_v0  ;;  %v1725_v2 = vld [vmem:[#allocation6 + $0xc] ss:$16 sps:$4 sm:$0xff]   ;;  %v1727_v3 = vld [vmem:[#allocation6] ss:$16 sps:$4 sm:$0xff]   ;;  %v1728_v4 = vld [vmem:[#allocation6 + $0x8] ss:$16 sps:$4 sm:$0xff]  }
  0x39   :  { %306 = vmatprep.subr.bf16.mxu0 %v1723_v1  ;;  %379 = vmatprep.subr.bf16.mxu1 %v1725_v2  ;;  %v1729_v5 = vld [vmem:[#allocation6 + $0x24] ss:$16 sps:$4 sm:$0xff]   ;;  %v1731_v6 = vld [vmem:[#allocation6 + $0x2c] ss:$16 sps:$4 sm:$0xff]   ;;  %v1733_v7 = vld [vmem:[#allocation6 + $0x20] ss:$16 sps:$4 sm:$0xff]  }
  0x3a   :  { %307 = vmatpush1.bf16.msra.mxu0 %v1727_v3  ;;  %380 = vmatpush1.bf16.msra.mxu1 %v1728_v4  ;;  %v1734_v8 = vld [vmem:[#allocation6 + $0x28] ss:$16 sps:$4 sm:$0xff]   ;;  %v1735_v9 = vld [vmem:[#allocation6 + $0x44] ss:$16 sps:$4 sm:$0xff]   ;;  %v1737_v10 = vld [vmem:[#allocation6 + $0x4c] ss:$16 sps:$4 sm:$0xff]  }
  0x3b   :  { %308 = vmatprep.subr.bf16.mxu0 %v1729_v5  ;;  %381 = vmatprep.subr.bf16.mxu1 %v1731_v6  ;;  %v1739_v11 = vld [vmem:[#allocation6 + $0x40] ss:$16 sps:$4 sm:$0xff]   ;;  %v1740_v12 = vld [vmem:[#allocation6 + $0x48] ss:$16 sps:$4 sm:$0xff]   ;;  %v1741_v13 = vld [vmem:[#allocation6 + $0x64] ss:$16 sps:$4 sm:$0xff]   ;;  %v102_v6 = vlaneseq }
  0x3c   :  { %v1743_v14 = vld [vmem:[#allocation6 + $0x6c] ss:$16 sps:$4 sm:$0xff]   ;;  %v1745_v15 = vld [vmem:[#allocation6 + $0x60] ss:$16 sps:$4 sm:$0xff]   ;;  %v1746_v16 = vld [vmem:[#allocation6 + $0x68] ss:$16 sps:$4 sm:$0xff]  }
  0x3d   :  { %v1747_v17 = vld [vmem:[#allocation6 + $0x84] ss:$16 sps:$4 sm:$0xff]   ;;  %v1749_v18 = vld [vmem:[#allocation6 + $0x8c] ss:$16 sps:$4 sm:$0xff]   ;;  %v1751_v19 = vld [vmem:[#allocation6 + $0x80] ss:$16 sps:$4 sm:$0xff]  }
  0x3e   :  { %309 = vmatpush1.bf16.msra.mxu0 %v1733_v7  ;;  %382 = vmatpush1.bf16.msra.mxu1 %v1734_v8  ;;  %v1752_v20 = vld [vmem:[#allocation6 + $0x88] ss:$16 sps:$4 sm:$0xff]   ;;  %v1753_v21 = vld [vmem:[#allocation6 + $0xa4] ss:$16 sps:$4 sm:$0xff]   ;;  %v1755_v22 = vld [vmem:[#allocation6 + $0xac] ss:$16 sps:$4 sm:$0xff]  }
  0x3f   :  { %310 = vmatprep.subr.bf16.mxu0 %v1735_v9  ;;  %383 = vmatprep.subr.bf16.mxu1 %v1737_v10  ;;  %v1757_v23 = vld [vmem:[#allocation6 + $0xa0] ss:$16 sps:$4 sm:$0xff]   ;;  %v1758_v24 = vld [vmem:[#allocation6 + $0xa8] ss:$16 sps:$4 sm:$0xff]   ;;  %v1759_v25 = vld [vmem:[#allocation6 + $0xc4] ss:$16 sps:$4 sm:$0xff]  }
  0x40   :  { %v1761_v26 = vld [vmem:[#allocation6 + $0xcc] ss:$16 sps:$4 sm:$0xff]   ;;  %v1763_v27 = vld [vmem:[#allocation6 + $0xc0] ss:$16 sps:$4 sm:$0xff]   ;;  %v1764_v28 = vld [vmem:[#allocation6 + $0xc8] ss:$16 sps:$4 sm:$0xff]  }
  0x41   :  { %v1765_v29 = vld [vmem:[#allocation6 + $0xe4] ss:$16 sps:$4 sm:$0xff]   ;;  %v1767_v30 = vld [vmem:[#allocation6 + $0xec] ss:$16 sps:$4 sm:$0xff]   ;;  %v1769_v31 = vld [vmem:[#allocation6 + $0xe0] ss:$16 sps:$4 sm:$0xff]  }
  0x42   :  { %311 = vmatpush1.bf16.msra.mxu0 %v1739_v11  ;;  %384 = vmatpush1.bf16.msra.mxu1 %v1740_v12  ;;  %v1770_v32 = vld [vmem:[#allocation6 + $0xe8] ss:$16 sps:$4 sm:$0xff]   ;;  %v2158_v33 = vld [vmem:[#allocation8 + $0x4] ss:$16 sps:$4 sm:$0xff]   ;;  %v2160_v34 = vld [vmem:[#allocation8 + $0xc] ss:$16 sps:$4 sm:$0xff]  }
  0x43   :  { %312 = vmatprep.subr.bf16.mxu0 %v1741_v13  ;;  %385 = vmatprep.subr.bf16.mxu1 %v1743_v14  ;;  %v1771_v35 = vld [vmem:[#allocation3] sm:$0xff]   ;;  %v2164_v37 = vld [vmem:[#allocation8 + $0x8] ss:$16 sps:$4 sm:$0xff]   ;;  %v2170_v39 = vld [vmem:[#allocation8 + $0x2c] ss:$16 sps:$4 sm:$0xff]   ;;  %v103_v7 = vshrl.u32 %v102_v6, 7 }
  0x44   :  { %v2162_v36 = vld [vmem:[#allocation8] ss:$16 sps:$4 sm:$0xff]   ;;  %v2168_v38 = vld [vmem:[#allocation8 + $0x24] ss:$16 sps:$4 sm:$0xff]   ;;  %v2176_v41 = vld [vmem:[#allocation8 + $0x28] ss:$16 sps:$4 sm:$0xff]  }
  0x45   :  { %v2172_v40 = vld [vmem:[#allocation8 + $0x20] ss:$16 sps:$4 sm:$0xff]   ;;  %v2180_v42 = vld [vmem:[#allocation8 + $0x44] ss:$16 sps:$4 sm:$0xff]   ;;  %v2182_v43 = vld [vmem:[#allocation8 + $0x4c] ss:$16 sps:$4 sm:$0xff]  }
  0x46   :  { %313 = vmatpush1.bf16.msra.mxu0 %v1745_v15  ;;  %386 = vmatpush1.bf16.msra.mxu1 %v1746_v16  ;;  %v2186_v45 = vld [vmem:[#allocation8 + $0x40] ss:$16 sps:$4 sm:$0xff]   ;;  %v2188_v46 = vld [vmem:[#allocation8 + $0x48] ss:$16 sps:$4 sm:$0xff]   ;;  %v2192_v47 = vld [vmem:[#allocation8 + $0x64] ss:$16 sps:$4 sm:$0xff]  }
  0x47   :  { %314 = vmatprep.subr.bf16.mxu0 %v1747_v17  ;;  %387 = vmatprep.subr.bf16.mxu1 %v1749_v18  ;;  %v2196_v48 = vld [vmem:[#allocation8 + $0x6c] ss:$16 sps:$4 sm:$0xff]   ;;  %v2198_v49 = vld [vmem:[#allocation8 + $0x60] ss:$16 sps:$4 sm:$0xff]   ;;  %v2200_v50 = vld [vmem:[#allocation8 + $0x68] ss:$16 sps:$4 sm:$0xff]  }
  0x48   :  { %v2204_v51 = vld [vmem:[#allocation8 + $0x84] ss:$16 sps:$4 sm:$0xff]   ;;  %v2208_v52 = vld [vmem:[#allocation8 + $0x8c] ss:$16 sps:$4 sm:$0xff]   ;;  %v2214_v54 = vld [vmem:[#allocation8 + $0x80] ss:$16 sps:$4 sm:$0xff]  }
  0x49   :  { %v1797_v53 = vld [vmem:[#allocation3 + $0x10] sm:$0xff]   ;;  %v2216_v55 = vld [vmem:[#allocation8 + $0x88] ss:$16 sps:$4 sm:$0xff]   ;;  %v2222_v57 = vld [vmem:[#allocation8 + $0xac] ss:$16 sps:$4 sm:$0xff]   ;;  %v112_v8 = vsub.s32 2, %v103_v7 }
  0x4a   :  { %315 = vmatpush1.bf16.msra.mxu0 %v1751_v19  ;;  %388 = vmatpush1.bf16.msra.mxu1 %v1752_v20  ;;  %v2220_v56 = vld [vmem:[#allocation8 + $0xa4] ss:$16 sps:$4 sm:$0xff]   ;;  %v2226_v58 = vld [vmem:[#allocation8 + $0xa0] ss:$16 sps:$4 sm:$0xff]   ;;  %v2228_v59 = vld [vmem:[#allocation8 + $0xa8] ss:$16 sps:$4 sm:$0xff]  }
  0x4b   :  { %316 = vmatprep.subr.bf16.mxu0 %v1753_v21  ;;  %389 = vmatprep.subr.bf16.mxu1 %v1755_v22  ;;  %v2232_v60 = vld [vmem:[#allocation8 + $0xc4] ss:$16 sps:$4 sm:$0xff]   ;;  %v2234_v61 = vld [vmem:[#allocation8 + $0xcc] ss:$16 sps:$4 sm:$0xff]   ;;  %v2240_v63 = vld [vmem:[#allocation8 + $0xc0] ss:$16 sps:$4 sm:$0xff]  }
  0x4c   :  { %v1810_v62 = vld [vmem:[#allocation3 + $0x18] sm:$0xff]   ;;  %v2246_v2 = vld [vmem:[#allocation8 + $0xe4] ss:$16 sps:$4 sm:$0xff]   ;;  %v2252_v4 = vld [vmem:[#allocation8 + $0xe0] ss:$16 sps:$4 sm:$0xff]   ;;  %v116_v9 = vsub.s32 3, %v103_v7 }
  0x4d   :  { %v2242_v1 = vld [vmem:[#allocation8 + $0xc8] ss:$16 sps:$4 sm:$0xff]   ;;  %v2248_v3 = vld [vmem:[#allocation8 + $0xec] ss:$16 sps:$4 sm:$0xff]   ;;  %v104_v10 = vsub.s32 0, %v103_v7  ;;  %v108_v12 = vsub.s32 1, %v103_v7 }
  0x4e   :  { %317 = vmatpush1.bf16.msra.mxu0 %v1757_v23  ;;  %390 = vmatpush1.bf16.msra.mxu1 %v1758_v24  ;;  %v2254_v5 = vld [vmem:[#allocation8 + $0xe8] ss:$16 sps:$4 sm:$0xff]   ;;  %v100_v11 = vld [vmem:[%s2691_s3] sm:$0xf]  ;;  %s2085_s3 = smov [#allocation9]  }
  0x4f   :  { %318 = vmatprep.subr.bf16.mxu0 %v1759_v25  ;;  %391 = vmatprep.subr.bf16.mxu1 %v1761_v26  ;;  %v2303_v13 = vrot.slane %v100_v11, %v112_v8  ;;  %v2309_v16 = vrot.slane %v100_v11, %v116_v9  ;;  %v105_v17 = vrot.slane %v100_v11, %v104_v10  ;;  %s1609_s26 = sshll.u32 %s2085_s3, 4  ;;  %s1610_s26 = int_to_ptr.vmem [resolvable:$true] %s1609_s26 }
  0x50   :  { %v109_v20 = vrot.slane %v100_v11, %v108_v12  ;;  %s2049_s29 = scalar_lea.vmem %s1610_s26, 512  ;;  %p2054_p11 = scmp.lt.s32.totalorder %s1610_s26, %s1610_s26 }
  0x51   :  { %p2050_p10 = scmp.ne.s32.totalorder %s1610_s26, %s2049_s29  ;;  %p2055_p12 = scmp.lt.s32.totalorder %s2049_s29, %s2049_s29 }
  0x52   :  { %319 = vmatpush1.bf16.msra.mxu0 %v1763_v27  ;;  %392 = vmatpush1.bf16.msra.mxu1 %v1764_v28 }
  0x53   :  { %320 = vmatprep.subr.bf16.mxu0 %v1765_v29  ;;  %393 = vmatprep.subr.bf16.mxu1 %v1767_v30  ;;  %p2056_p13 = por %p2055_p12, %p2054_p11 }
  0x55   :  { %p2057_p0 = pnand %p2056_p13, %p2050_p10 }
  0x56   :  { %321 = vmatpush1.bf16.msra.mxu0 %v1769_v31  ;;  %394 = vmatpush1.bf16.msra.mxu1 %v1770_v32 }
  0x57   :  { %680 = vmatprep.subr.bf16.mxu0 %v2158_v33  ;;  %721 = vmatprep.subr.bf16.mxu1 %v2160_v34 }
  0x59   :  { %339 = vmatmul.mubr.bf16.vlgmr.msra.gmra.mrb[0].mxu0 %v1771_v35  ;;  %412 = vmatmul.mubr.bf16.vlgmr.msra.gmra.mrb[0].mxu1 %v1771_v35 }
  0x5a   :  { %681 = vmatpush1.bf16.msra.mxu0 %v2162_v36  ;;  %722 = vmatpush1.bf16.msra.mxu1 %v2164_v37 }
  0x5b   :  { %682 = vmatprep.subr.bf16.mxu0 %v2168_v38  ;;  %723 = vmatprep.subr.bf16.mxu1 %v2170_v39 }
  0x5c   :  { %348 = vmatprep.mubr.bf16.mxu0 %v2693_v0  ;;  %421 = vmatprep.mubr.bf16.mxu1 %v2693_v0 }
  0x5e   :  { %683 = vmatpush1.bf16.msra.mxu0 %v2172_v40  ;;  %724 = vmatpush1.bf16.msra.mxu1 %v2176_v41 }
  0x5f   :  { %684 = vmatprep.subr.bf16.mxu0 %v2180_v42  ;;  %725 = vmatprep.subr.bf16.mxu1 %v2182_v43 }
  0x61   :  { %349 = vmatmul.mubr.bf16.gmra.mrb[4].mxu0 %v1784_v44  ;;  %422 = vmatmul.mubr.bf16.gmra.mrb[4].mxu1 %v1784_v44 }
  0x62   :  { %685 = vmatpush1.bf16.msra.mxu0 %v2186_v45  ;;  %726 = vmatpush1.bf16.msra.mxu1 %v2188_v46 }
  0x63   :  { %686 = vmatprep.subr.bf16.mxu0 %v2192_v47  ;;  %727 = vmatprep.subr.bf16.mxu1 %v2196_v48 }
  0x64   :  { %358 = vmatprep.mubr.bf16.mxu0 %v2693_v0  ;;  %431 = vmatprep.mubr.bf16.mxu1 %v2693_v0 }
  0x66   :  { %687 = vmatpush1.bf16.msra.mxu0 %v2198_v49  ;;  %728 = vmatpush1.bf16.msra.mxu1 %v2200_v50 }
  0x67   :  { %688 = vmatprep.subr.bf16.mxu0 %v2204_v51  ;;  %729 = vmatprep.subr.bf16.mxu1 %v2208_v52 }
  0x69   :  { %359 = vmatmul.mubr.bf16.gmra.mrb[8].mxu0 %v1797_v53  ;;  %432 = vmatmul.mubr.bf16.gmra.mrb[8].mxu1 %v1797_v53 }
  0x6a   :  { %689 = vmatpush1.bf16.msra.mxu0 %v2214_v54  ;;  %730 = vmatpush1.bf16.msra.mxu1 %v2216_v55 }
  0x6b   :  { %690 = vmatprep.subr.bf16.mxu0 %v2220_v56  ;;  %731 = vmatprep.subr.bf16.mxu1 %v2222_v57 }
  0x6c   :  { %368 = vmatprep.mubr.bf16.mxu0 %v2693_v0  ;;  %441 = vmatprep.mubr.bf16.mxu1 %v2693_v0 }
  0x6e   :  { %691 = vmatpush1.bf16.msra.mxu0 %v2226_v58  ;;  %732 = vmatpush1.bf16.msra.mxu1 %v2228_v59 }
  0x6f   :  { %692 = vmatprep.subr.bf16.mxu0 %v2232_v60  ;;  %733 = vmatprep.subr.bf16.mxu1 %v2234_v61 }
  0x71   :  { %369 = vmatmul.mubr.bf16.gmra.mrb[12].mxu0 %v1810_v62  ;;  %442 = vmatmul.mubr.bf16.gmra.mrb[12].mxu1 %v1810_v62 }
  0x72   :  { %693 = vmatpush1.bf16.msra.mxu0 %v2240_v63  ;;  %734 = vmatpush1.bf16.msra.mxu1 %v2242_v1 }
  0x73   :  { %694 = vmatprep.subr.bf16.mxu0 %v2246_v2  ;;  %735 = vmatprep.subr.bf16.mxu1 %v2248_v3 }
  0x74   :  { %712 = vmatprep.mubr.bf16.mxu0 %v2693_v0  ;;  %753 = vmatprep.mubr.bf16.mxu1 %v2693_v0 }
  0x76   :  { %695 = vmatpush1.bf16.msra.mxu0 %v2252_v4  ;;  %736 = vmatpush1.bf16.msra.mxu1 %v2254_v5 }
  0x77   :  { %796 = vmatprep.subr.bf16.mxu0 %v2158_v33  ;;  %837 = vmatprep.subr.bf16.mxu1 %v2160_v34 }
  0x79   :  { %713 = vmatmul.mubr.bf16.vlgmr.msra.gmra.mrb[16].mxu0 %v2693_v0  ;;  %754 = vmatmul.mubr.bf16.vlgmr.msra.gmra.mrb[16].mxu1 %v2693_v0 }
  0x7a   :  { %797 = vmatpush1.bf16.msra.mxu0 %v2162_v36  ;;  %838 = vmatpush1.bf16.msra.mxu1 %v2164_v37 }
  0x7b   :  { %798 = vmatprep.subr.bf16.mxu0 %v2168_v38  ;;  %839 = vmatprep.subr.bf16.mxu1 %v2170_v39 }
  0x7c   :  { %828 = vmatprep.mubr.bf16.mxu0 %v2693_v0  ;;  %869 = vmatprep.mubr.bf16.mxu1 %v2693_v0 }
  0x7e   :  { %799 = vmatpush1.bf16.msra.mxu0 %v2172_v40  ;;  %840 = vmatpush1.bf16.msra.mxu1 %v2176_v41 }
  0x7f   :  { %800 = vmatprep.subr.bf16.mxu0 %v2180_v42  ;;  %841 = vmatprep.subr.bf16.mxu1 %v2182_v43 }
  0x82   :  { %801 = vmatpush1.bf16.msra.mxu0 %v2186_v45  ;;  %842 = vmatpush1.bf16.msra.mxu1 %v2188_v46 }
  0x83   :  { %802 = vmatprep.subr.bf16.mxu0 %v2192_v47  ;;  %843 = vmatprep.subr.bf16.mxu1 %v2196_v48 }
  0x86   :  { %803 = vmatpush1.bf16.msra.mxu0 %v2198_v49  ;;  %844 = vmatpush1.bf16.msra.mxu1 %v2200_v50 }
  0x87   :  { %804 = vmatprep.subr.bf16.mxu0 %v2204_v51  ;;  %845 = vmatprep.subr.bf16.mxu1 %v2208_v52 }
  0x8a   :  { %805 = vmatpush1.bf16.msra.mxu0 %v2214_v54  ;;  %846 = vmatpush1.bf16.msra.mxu1 %v2216_v55 }
  0x8b   :  { %806 = vmatprep.subr.bf16.mxu0 %v2220_v56  ;;  %847 = vmatprep.subr.bf16.mxu1 %v2222_v57 }
  0x8e   :  { %807 = vmatpush1.bf16.msra.mxu0 %v2226_v58  ;;  %848 = vmatpush1.bf16.msra.mxu1 %v2228_v59 }
  0x8f   :  { %808 = vmatprep.subr.bf16.mxu0 %v2232_v60  ;;  %849 = vmatprep.subr.bf16.mxu1 %v2234_v61 }
  0x92   :  { %809 = vmatpush1.bf16.msra.mxu0 %v2240_v63  ;;  %850 = vmatpush1.bf16.msra.mxu1 %v2242_v1 }
  0x93   :  { %810 = vmatprep.subr.bf16.mxu0 %v2246_v2  ;;  %851 = vmatprep.subr.bf16.mxu1 %v2248_v3 }
  0x96   :  { %811 = vmatpush1.bf16.msra.mxu0 %v2252_v4  ;;  %852 = vmatpush1.bf16.msra.mxu1 %v2254_v5 }
  0x97   :  { %912 = vmatprep.subr.bf16.mxu0 %v2158_v33  ;;  %953 = vmatprep.subr.bf16.mxu1 %v2160_v34 }
 0x12c   :  { %v2305_v14 = vpop.f32.mrb[0].mxu0  ;;  %v2307_v15 = vpop.f32.mrb[0].mxu1 }
 0x12d   :  { %v342_v18 = vpop.f32.mrb[1].mxu0  ;;  %v415_v19 = vpop.f32.mrb[1].mxu1 }
 0x12e   :  { %v344_v21 = vpop.f32.mrb[2].mxu0  ;;  %v417_v22 = vpop.f32.mrb[2].mxu1 }
 0x12f   :  { %v2311_v23 = vadd.f32 %v344_v21, %v105_v17  ;;  %v346_v24 = vpop.f32.mrb[3].mxu0  ;;  %v2314_v25 = vadd.f32 %v417_v22, %v2303_v13  ;;  %v419_v26 = vpop.f32.mrb[3].mxu1 }
 0x130   :  { %v2316_v27 = vadd.f32 %v346_v24, %v109_v20  ;;  %v2319_v28 = vadd.f32 %v419_v26, %v2309_v16 }
 0x134   :  { %v350_v29 = vpop.f32.mrb[4].mxu0  ;;  %v423_v30 = vpop.f32.mrb[4].mxu1 }
 0x135   :  { %v2321_v31 = vadd.f32 %v350_v29, %v105_v17  ;;  %v352_v32 = vpop.f32.mrb[5].mxu0  ;;  %v2324_v35 = vadd.f32 %v423_v30, %v2303_v13  ;;  %v425_v44 = vpop.f32.mrb[5].mxu1 }
 0x136   :  { %v2326_v53 = vadd.f32 %v352_v32, %v109_v20  ;;  %v354_v62 = vpop.f32.mrb[6].mxu0  ;;  %v2329_v6 = vadd.f32 %v425_v44, %v2309_v16  ;;  %v427_v7 = vpop.f32.mrb[6].mxu1 }
 0x137   :  { %v2331_v8 = vadd.f32 %v354_v62, %v105_v17  ;;  %v356_v9 = vpop.f32.mrb[7].mxu0  ;;  %v2334_v10 = vadd.f32 %v427_v7, %v2303_v13  ;;  %v429_v11 = vpop.f32.mrb[7].mxu1 }
 0x138   :  { %2695 = vst [vmem:[#allocation13_spill] sm:$0xff] %v2329_v6  ;;  %v2336_v12 = vadd.f32 %v356_v9, %v109_v20  ;;  %v2339_v21 = vadd.f32 %v429_v11, %v2309_v16 }
 0x139   :  { %2696 = vst [vmem:[#allocation14_spill] sm:$0xff] %v2331_v8  ;;  %2697 = vst [vmem:[#allocation15_spill] sm:$0xff] %v2334_v10 }
 0x13a   :  { %2698 = vst [vmem:[#allocation16_spill] sm:$0xff] %v2336_v12  ;;  %2699 = vst [vmem:[#allocation17_spill] sm:$0xff] %v2339_v21 }
 0x13c   :  { %v360_v22 = vpop.f32.mrb[8].mxu0  ;;  %v433_v24 = vpop.f32.mrb[8].mxu1 }
 0x13d   :  { %v2341_v26 = vadd.f32 %v360_v22, %v105_v17  ;;  %v362_v29 = vpop.f32.mrb[9].mxu0  ;;  %v2344_v30 = vadd.f32 %v433_v24, %v2303_v13  ;;  %v435_v32 = vpop.f32.mrb[9].mxu1 }
 0x13e   :  { %v2346_v44 = vadd.f32 %v362_v29, %v109_v20  ;;  %v364_v62 = vpop.f32.mrb[10].mxu0  ;;  %v2349_v7 = vadd.f32 %v435_v32, %v2309_v16  ;;  %v437_v9 = vpop.f32.mrb[10].mxu1 }
 0x13f   :  { %2700 = vst [vmem:[#allocation18_spill] sm:$0xff] %v2341_v26  ;;  %2701 = vst [vmem:[#allocation19_spill] sm:$0xff] %v2344_v30  ;;  %v2351_v0 = vadd.f32 %v364_v62, %v105_v17  ;;  %v366_v11 = vpop.f32.mrb[11].mxu0  ;;  %v2354_v21 = vadd.f32 %v437_v9, %v2303_v13  ;;  %v439_v22 = vpop.f32.mrb[11].mxu1 }
 0x140   :  { %2702 = vst [vmem:[#allocation20_spill] sm:$0xff] %v2346_v44  ;;  %2703 = vst [vmem:[#allocation21_spill] sm:$0xff] %v2349_v7  ;;  %v2356_v26 = vadd.f32 %v366_v11, %v109_v20  ;;  %v2359_v24 = vadd.f32 %v439_v22, %v2309_v16 }
 0x141   :  { %2704 = vst [vmem:[#allocation22_spill] sm:$0xff] %v2351_v0  ;;  %2705 = vst [vmem:[#allocation23_spill] sm:$0xff] %v2354_v21 }
 0x142   :  { %2706 = vst [vmem:[#allocation24_spill] sm:$0xff] %v2356_v26  ;;  %2707 = vst [vmem:[#allocation25_spill] sm:$0xff] %v2359_v24 }
 0x144   :  { %v370_v30 = vpop.f32.mrb[12].mxu0  ;;  %v443_v29 = vpop.f32.mrb[12].mxu1 }
 0x145   :  { %v2361_v44 = vadd.f32 %v370_v30, %v105_v17  ;;  %v372_v12 = vpop.f32.mrb[13].mxu0  ;;  %v2364_v32 = vadd.f32 %v443_v29, %v2303_v13  ;;  %v445_v62 = vpop.f32.mrb[13].mxu1 }
 0x146   :  { %v2366_v0 = vadd.f32 %v372_v12, %v109_v20  ;;  %v374_v7 = vpop.f32.mrb[14].mxu0  ;;  %v2369_v9 = vadd.f32 %v445_v62, %v2309_v16  ;;  %v447_v11 = vpop.f32.mrb[14].mxu1  ;;  %v341_v12 = vadd.f32 %v2305_v14, %v105_v17  ;;  %v343_v62 = vadd.f32 %v342_v18, %v109_v20 }
 0x147   :  { %2708 = vst [vmem:[#allocation26_spill] sm:$0xff] %v2361_v44  ;;  %2709 = vst [vmem:[#allocation27_spill] sm:$0xff] %v2364_v32  ;;  %v2371_v26 = vadd.f32 %v374_v7, %v105_v17  ;;  %v376_v22 = vpop.f32.mrb[15].mxu0  ;;  %v2374_v24 = vadd.f32 %v447_v11, %v2303_v13  ;;  %v449_v30 = vpop.f32.mrb[15].mxu1 }
 0x148   :  { %2710 = vst [vmem:[#allocation28_spill] sm:$0xff] %v2366_v0  ;;  %2711 = vst [vmem:[#allocation29_spill] sm:$0xff] %v2369_v9  ;;  %v2376_v44 = vadd.f32 %v376_v22, %v109_v20  ;;  %v2379_v29 = vadd.f32 %v449_v30, %v2309_v16  ;;  %v414_v0 = vadd.f32 %v2307_v15, %v2303_v13 }
 0x149   :  { %2712 = vst [vmem:[#allocation30_spill] sm:$0xff] %v2371_v26  ;;  %2713 = vst [vmem:[#allocation31_spill] sm:$0xff] %v2374_v24  ;;  %v416_v9 = vadd.f32 %v415_v19, %v2309_v16 }
 0x14a   :  { %2714 = vst [vmem:[#allocation32_spill] sm:$0xff] %v2376_v44  ;;  %2715 = vst [vmem:[#allocation33_spill] sm:$0xff] %v2379_v29 }
 0x14c   :  { %v714_v7 = vpop.f32.mrb[16].mxu0  ;;  %v755_v26 = vpop.f32.mrb[16].mxu1 }
 0x14d   :  { %v762_v32 = vadd.f32 %v714_v7, %v341_v12  ;;  %v764_v21 = vadd.f32 %v755_v26, %v414_v0  ;;  %v716_v11 = vpop.f32.mrb[17].mxu0  ;;  %v757_v24 = vpop.f32.mrb[17].mxu1 }
 0x14e   :  { %v763_v10 = vadd.f32 %v716_v11, %v343_v62  ;;  %v765_v22 = vadd.f32 %v757_v24, %v416_v9  ;;  %v718_v44 = vpop.f32.mrb[18].mxu0  ;;  %v759_v8 = vpop.f32.mrb[18].mxu1 }
 0x14f   :  { %v1690_v30 = vmul.f32 -1.442695, %v762_v32  ;;  %v719_v29 = vpop.f32.mrb[19].mxu0  ;;  %v760_v6 = vpop.f32.mrb[19].mxu1 }
 0x150   :  { %v1691_v14 = vmul.f32 -1.442695, %v763_v10  ;;  %v1692_v13 = vmul.f32 -1.442695, %v765_v22 }
 0x151   :  { %1823 = vpow2.f32 %v1690_v30 }
 0x152   :  { %1825 = vpow2.f32 %v1691_v14 }
 0x153   :  { %1827 = vpow2.f32 %v1692_v13 }
 0x154   :  { %1829 = vtanh.f32 %v764_v21  ;;  %v2716_v21 = vmov 0  }
 0x15b   :  { %v1824_v15 = vpop.eup %1823 }
 0x15c   :  { %v1826_v17 = vpop.eup %1825  ;;  %v769_v16 = vadd.f32 1.0, %v1824_v15 }
 0x15d   :  { %v775_v18 = vadd.f32 1.0, %v1826_v17  ;;  %v1828_v0 = vpop.eup %1827 }
 0x15e   :  { %1831 = vrcp.f32 %v769_v16  ;;  %v1830_v19 = vpop.eup %1829  ;;  %v782_v44 = vadd.f32 1.0, %v1828_v0 }
 0x15f   :  { %1833 = vrcp.f32 %v775_v18 }
 0x160   :  { %1835 = vrcp.f32 %v782_v44 }
 0x168   :  { %v1832_v20 = vpop.eup %1831 }
 0x169   :  { %v1834_v26 = vpop.eup %1833  ;;  %v786_v8 = vmul.f32 %v1832_v20, %v1830_v19 }
 0x16a   :  { %v785_v24 = vmul.f32 0.0, %v1834_v26  ;;  %v1836_v10 = vpop.eup %1835 }
 0x16c   :  { %v2385_v6 = vadd.f32 %v786_v8, %v785_v24 }
 0x16e   :  { %1837 = vtanh.f32 %v2385_v6 }
 0x178   :  { %v1838_v32 = vpop.eup %1837 }
 0x179   :  { %v789_v9 = vmul.f32 %v1838_v32, %v1836_v10 }
 0x17b   :  { %v790_v29 = vpack.c.bf16 %v789_v9, %v789_v9 }
 0x17d   :  { %791 = vst [vmem:[#allocation9] sm:$0xf] %v790_v29  ;;  %829 = vmatmul.mubr.bf16.vlgmr.msra.gmra.mrb[20].mxu0 %v790_v29  ;;  %870 = vmatmul.mubr.bf16.vlgmr.msra.gmra.mrb[20].mxu1 %v790_v29 }
 0x17e   :  { %913 = vmatpush1.bf16.msra.mxu0 %v2162_v36  ;;  %954 = vmatpush1.bf16.msra.mxu1 %v2164_v37 }
 0x17f   :  { %914 = vmatprep.subr.bf16.mxu0 %v2168_v38  ;;  %955 = vmatprep.subr.bf16.mxu1 %v2170_v39 }
 0x180   :  { %944 = vmatprep.mubr.bf16.mxu0 %v2716_v21  ;;  %985 = vmatprep.mubr.bf16.mxu1 %v2716_v21 }
 0x182   :  { %915 = vmatpush1.bf16.msra.mxu0 %v2172_v40  ;;  %956 = vmatpush1.bf16.msra.mxu1 %v2176_v41 }
 0x183   :  { %916 = vmatprep.subr.bf16.mxu0 %v2180_v42  ;;  %957 = vmatprep.subr.bf16.mxu1 %v2182_v43 }
 0x186   :  { %917 = vmatpush1.bf16.msra.mxu0 %v2186_v45  ;;  %958 = vmatpush1.bf16.msra.mxu1 %v2188_v46 }
 0x187   :  { %918 = vmatprep.subr.bf16.mxu0 %v2192_v47  ;;  %959 = vmatprep.subr.bf16.mxu1 %v2196_v48 }
 0x18a   :  { %919 = vmatpush1.bf16.msra.mxu0 %v2198_v49  ;;  %960 = vmatpush1.bf16.msra.mxu1 %v2200_v50 }
 0x18b   :  { %920 = vmatprep.subr.bf16.mxu0 %v2204_v51  ;;  %961 = vmatprep.subr.bf16.mxu1 %v2208_v52 }
 0x18e   :  { %921 = vmatpush1.bf16.msra.mxu0 %v2214_v54  ;;  %962 = vmatpush1.bf16.msra.mxu1 %v2216_v55 }
 0x18f   :  { %922 = vmatprep.subr.bf16.mxu0 %v2220_v56  ;;  %963 = vmatprep.subr.bf16.mxu1 %v2222_v57 }
 0x192   :  { %923 = vmatpush1.bf16.msra.mxu0 %v2226_v58  ;;  %964 = vmatpush1.bf16.msra.mxu1 %v2228_v59 }
 0x193   :  { %924 = vmatprep.subr.bf16.mxu0 %v2232_v60  ;;  %965 = vmatprep.subr.bf16.mxu1 %v2234_v61 }
 0x196   :  { %925 = vmatpush1.bf16.msra.mxu0 %v2240_v63  ;;  %966 = vmatpush1.bf16.msra.mxu1 %v2242_v1 }
 0x197   :  { %926 = vmatprep.subr.bf16.mxu0 %v2246_v2  ;;  %967 = vmatprep.subr.bf16.mxu1 %v2248_v3 }
 0x19a   :  { %927 = vmatpush1.bf16.msra.mxu0 %v2252_v4  ;;  %968 = vmatpush1.bf16.msra.mxu1 %v2254_v5 }
 0x19b   :  { %1028 = vmatprep.subr.bf16.mxu0 %v2158_v33  ;;  %1069 = vmatprep.subr.bf16.mxu1 %v2160_v34 }
 0x250   :  { %v830_v12 = vpop.f32.mrb[20].mxu0  ;;  %v871_v62 = vpop.f32.mrb[20].mxu1 }
 0x251   :  { %v878_v7 = vadd.f32 %v830_v12, %v2311_v23  ;;  %v880_v11 = vadd.f32 %v871_v62, %v2314_v25  ;;  %v832_v22 = vpop.f32.mrb[21].mxu0  ;;  %v873_v30 = vpop.f32.mrb[21].mxu1 }
 0x252   :  { %v879_v14 = vadd.f32 %v832_v22, %v2316_v27  ;;  %v881_v13 = vadd.f32 %v873_v30, %v2319_v28  ;;  %v834_v15 = vpop.f32.mrb[22].mxu0  ;;  %v875_v17 = vpop.f32.mrb[22].mxu1 }
 0x253   :  { %v1693_v16 = vmul.f32 -1.442695, %v878_v7  ;;  %v835_v18 = vpop.f32.mrb[23].mxu0  ;;  %v876_v0 = vpop.f32.mrb[23].mxu1 }
 0x254   :  { %v1694_v19 = vmul.f32 -1.442695, %v879_v14  ;;  %v1695_v20 = vmul.f32 -1.442695, %v881_v13 }
 0x255   :  { %1839 = vpow2.f32 %v1693_v16  ;;  %v2717_v16 = vld [vmem:[#allocation13_spill] sm:$0xff] }
 0x256   :  { %1841 = vpow2.f32 %v1694_v19 }
 0x257   :  { %1843 = vpow2.f32 %v1695_v20 }
 0x258   :  { %1845 = vtanh.f32 %v880_v11 }
 0x25f   :  { %v1840_v26 = vpop.eup %1839 }
 0x260   :  { %v1842_v8 = vpop.eup %1841  ;;  %v885_v23 = vadd.f32 1.0, %v1840_v26 }
 0x261   :  { %v891_v25 = vadd.f32 1.0, %v1842_v8  ;;  %v1844_v27 = vpop.eup %1843 }
 0x262   :  { %1847 = vrcp.f32 %v885_v23  ;;  %v1846_v44 = vpop.eup %1845  ;;  %v898_v32 = vadd.f32 1.0, %v1844_v27 }
 0x263   :  { %1849 = vrcp.f32 %v891_v25 }
 0x264   :  { %1851 = vrcp.f32 %v898_v32 }
 0x26c   :  { %v1848_v28 = vpop.eup %1847 }
 0x26d   :  { %v1850_v24 = vpop.eup %1849  ;;  %v902_v10 = vmul.f32 %v1848_v28, %v1846_v44 }
 0x26e   :  { %v901_v9 = vmul.f32 %v1850_v24, %v2385_v6  ;;  %v1852_v12 = vpop.eup %1851 }
 0x270   :  { %v2427_v29 = vadd.f32 %v902_v10, %v901_v9 }
 0x272   :  { %1853 = vtanh.f32 %v2427_v29 }
 0x27c   :  { %v1854_v62 = vpop.eup %1853 }
 0x27d   :  { %v905_v7 = vmul.f32 %v1854_v62, %v1852_v12 }
 0x27f   :  { %v906_v11 = vpack.c.bf16 %v905_v7, %v905_v7 }
 0x281   :  { %907 = vst [vmem:[#allocation9 + $0x4] sm:$0xf] %v906_v11  ;;  %945 = vmatmul.mubr.bf16.vlgmr.msra.gmra.mrb[24].mxu0 %v906_v11  ;;  %986 = vmatmul.mubr.bf16.vlgmr.msra.gmra.mrb[24].mxu1 %v906_v11 }
 0x282   :  { %1029 = vmatpush1.bf16.msra.mxu0 %v2162_v36  ;;  %1070 = vmatpush1.bf16.msra.mxu1 %v2164_v37 }
 0x283   :  { %1030 = vmatprep.subr.bf16.mxu0 %v2168_v38  ;;  %1071 = vmatprep.subr.bf16.mxu1 %v2170_v39 }
 0x284   :  { %1060 = vmatprep.mubr.bf16.mxu0 %v2716_v21  ;;  %1101 = vmatprep.mubr.bf16.mxu1 %v2716_v21 }
 0x286   :  { %1031 = vmatpush1.bf16.msra.mxu0 %v2172_v40  ;;  %1072 = vmatpush1.bf16.msra.mxu1 %v2176_v41 }
 0x287   :  { %1032 = vmatprep.subr.bf16.mxu0 %v2180_v42  ;;  %1073 = vmatprep.subr.bf16.mxu1 %v2182_v43 }
 0x28a   :  { %1033 = vmatpush1.bf16.msra.mxu0 %v2186_v45  ;;  %1074 = vmatpush1.bf16.msra.mxu1 %v2188_v46 }
 0x28b   :  { %1034 = vmatprep.subr.bf16.mxu0 %v2192_v47  ;;  %1075 = vmatprep.subr.bf16.mxu1 %v2196_v48 }
 0x28e   :  { %1035 = vmatpush1.bf16.msra.mxu0 %v2198_v49  ;;  %1076 = vmatpush1.bf16.msra.mxu1 %v2200_v50 }
 0x28f   :  { %1036 = vmatprep.subr.bf16.mxu0 %v2204_v51  ;;  %1077 = vmatprep.subr.bf16.mxu1 %v2208_v52 }
 0x292   :  { %1037 = vmatpush1.bf16.msra.mxu0 %v2214_v54  ;;  %1078 = vmatpush1.bf16.msra.mxu1 %v2216_v55 }
 0x293   :  { %1038 = vmatprep.subr.bf16.mxu0 %v2220_v56  ;;  %1079 = vmatprep.subr.bf16.mxu1 %v2222_v57 }
 0x296   :  { %1039 = vmatpush1.bf16.msra.mxu0 %v2226_v58  ;;  %1080 = vmatpush1.bf16.msra.mxu1 %v2228_v59 }
 0x297   :  { %1040 = vmatprep.subr.bf16.mxu0 %v2232_v60  ;;  %1081 = vmatprep.subr.bf16.mxu1 %v2234_v61 }
 0x29a   :  { %1041 = vmatpush1.bf16.msra.mxu0 %v2240_v63  ;;  %1082 = vmatpush1.bf16.msra.mxu1 %v2242_v1 }
 0x29b   :  { %1042 = vmatprep.subr.bf16.mxu0 %v2246_v2  ;;  %1083 = vmatprep.subr.bf16.mxu1 %v2248_v3 }
 0x29e   :  { %1043 = vmatpush1.bf16.msra.mxu0 %v2252_v4  ;;  %1084 = vmatpush1.bf16.msra.mxu1 %v2254_v5 }
 0x29f   :  { %1144 = vmatprep.subr.bf16.mxu0 %v2158_v33  ;;  %1185 = vmatprep.subr.bf16.mxu1 %v2160_v34 }
 0x354   :  { %v946_v6 = vpop.f32.mrb[24].mxu0  ;;  %v987_v22 = vpop.f32.mrb[24].mxu1 }
 0x355   :  { %v994_v30 = vadd.f32 %v946_v6, %v2321_v31  ;;  %v996_v14 = vadd.f32 %v987_v22, %v2324_v35  ;;  %v948_v13 = vpop.f32.mrb[25].mxu0  ;;  %v989_v15 = vpop.f32.mrb[25].mxu1 }
 0x356   :  { %v995_v17 = vadd.f32 %v948_v13, %v2326_v53  ;;  %v997_v18 = vadd.f32 %v989_v15, %v2717_v16  ;;  %v950_v0 = vpop.f32.mrb[26].mxu0  ;;  %v991_v19 = vpop.f32.mrb[26].mxu1  ;;  %v2719_v15 = vld [vmem:[#allocation15_spill] sm:$0xff] }
 0x357   :  { %v1696_v20 = vmul.f32 -1.442695, %v994_v30  ;;  %v951_v26 = vpop.f32.mrb[27].mxu0  ;;  %v992_v8 = vpop.f32.mrb[27].mxu1  ;;  %v2720_v0 = vld [vmem:[#allocation16_spill] sm:$0xff] }
 0x358   :  { %v1697_v23 = vmul.f32 -1.442695, %v995_v17  ;;  %v1698_v25 = vmul.f32 -1.442695, %v997_v18 }
 0x359   :  { %1855 = vpow2.f32 %v1696_v20  ;;  %v2721_v20 = vld [vmem:[#allocation17_spill] sm:$0xff] }
 0x35a   :  { %1857 = vpow2.f32 %v1697_v23 }
 0x35b   :  { %1859 = vpow2.f32 %v1698_v25 }
 0x35c   :  { %1861 = vtanh.f32 %v996_v14  ;;  %v2718_v14 = vld [vmem:[#allocation14_spill] sm:$0xff] }
 0x363   :  { %v1856_v27 = vpop.eup %1855 }
 0x364   :  { %v1858_v44 = vpop.eup %1857  ;;  %v1001_v31 = vadd.f32 1.0, %v1856_v27 }
 0x365   :  { %v1007_v35 = vadd.f32 1.0, %v1858_v44  ;;  %v1860_v53 = vpop.eup %1859 }
 0x366   :  { %1863 = vrcp.f32 %v1001_v31  ;;  %v1862_v28 = vpop.eup %1861  ;;  %v1014_v9 = vadd.f32 1.0, %v1860_v53 }
 0x367   :  { %1865 = vrcp.f32 %v1007_v35 }
 0x368   :  { %1867 = vrcp.f32 %v1014_v9 }
 0x370   :  { %v1864_v24 = vpop.eup %1863 }
 0x371   :  { %v1866_v10 = vpop.eup %1865  ;;  %v1018_v32 = vmul.f32 %v1864_v24, %v1862_v28 }
 0x372   :  { %v1017_v12 = vmul.f32 %v1866_v10, %v2427_v29  ;;  %v1868_v7 = vpop.eup %1867 }
 0x374   :  { %v2469_v62 = vadd.f32 %v1018_v32, %v1017_v12 }
 0x376   :  { %1869 = vtanh.f32 %v2469_v62 }
 0x380   :  { %v1870_v11 = vpop.eup %1869 }
 0x381   :  { %v1021_v6 = vmul.f32 %v1870_v11, %v1868_v7 }
 0x383   :  { %v1022_v22 = vpack.c.bf16 %v1021_v6, %v1021_v6 }
 0x385   :  { %1023 = vst [vmem:[#allocation9 + $0x8] sm:$0xf] %v1022_v22  ;;  %1061 = vmatmul.mubr.bf16.vlgmr.msra.gmra.mrb[28].mxu0 %v1022_v22  ;;  %1102 = vmatmul.mubr.bf16.vlgmr.msra.gmra.mrb[28].mxu1 %v1022_v22 }
 0x386   :  { %1145 = vmatpush1.bf16.msra.mxu0 %v2162_v36  ;;  %1186 = vmatpush1.bf16.msra.mxu1 %v2164_v37 }
 0x387   :  { %1146 = vmatprep.subr.bf16.mxu0 %v2168_v38  ;;  %1187 = vmatprep.subr.bf16.mxu1 %v2170_v39 }
 0x388   :  { %1176 = vmatprep.mubr.bf16.mxu0 %v2716_v21  ;;  %1217 = vmatprep.mubr.bf16.mxu1 %v2716_v21 }
 0x38a   :  { %1147 = vmatpush1.bf16.msra.mxu0 %v2172_v40  ;;  %1188 = vmatpush1.bf16.msra.mxu1 %v2176_v41 }
 0x38b   :  { %1148 = vmatprep.subr.bf16.mxu0 %v2180_v42  ;;  %1189 = vmatprep.subr.bf16.mxu1 %v2182_v43 }
 0x38e   :  { %1149 = vmatpush1.bf16.msra.mxu0 %v2186_v45  ;;  %1190 = vmatpush1.bf16.msra.mxu1 %v2188_v46 }
 0x38f   :  { %1150 = vmatprep.subr.bf16.mxu0 %v2192_v47  ;;  %1191 = vmatprep.subr.bf16.mxu1 %v2196_v48 }
 0x392   :  { %1151 = vmatpush1.bf16.msra.mxu0 %v2198_v49  ;;  %1192 = vmatpush1.bf16.msra.mxu1 %v2200_v50 }
 0x393   :  { %1152 = vmatprep.subr.bf16.mxu0 %v2204_v51  ;;  %1193 = vmatprep.subr.bf16.mxu1 %v2208_v52 }
 0x396   :  { %1153 = vmatpush1.bf16.msra.mxu0 %v2214_v54  ;;  %1194 = vmatpush1.bf16.msra.mxu1 %v2216_v55 }
 0x397   :  { %1154 = vmatprep.subr.bf16.mxu0 %v2220_v56  ;;  %1195 = vmatprep.subr.bf16.mxu1 %v2222_v57 }
 0x39a   :  { %1155 = vmatpush1.bf16.msra.mxu0 %v2226_v58  ;;  %1196 = vmatpush1.bf16.msra.mxu1 %v2228_v59 }
 0x39b   :  { %1156 = vmatprep.subr.bf16.mxu0 %v2232_v60  ;;  %1197 = vmatprep.subr.bf16.mxu1 %v2234_v61 }
 0x39e   :  { %1157 = vmatpush1.bf16.msra.mxu0 %v2240_v63  ;;  %1198 = vmatpush1.bf16.msra.mxu1 %v2242_v1 }
 0x39f   :  { %1158 = vmatprep.subr.bf16.mxu0 %v2246_v2  ;;  %1199 = vmatprep.subr.bf16.mxu1 %v2248_v3 }
 0x3a2   :  { %1159 = vmatpush1.bf16.msra.mxu0 %v2252_v4  ;;  %1200 = vmatpush1.bf16.msra.mxu1 %v2254_v5 }
 0x3a3   :  { %1260 = vmatprep.subr.bf16.mxu0 %v2158_v33  ;;  %1301 = vmatprep.subr.bf16.mxu1 %v2160_v34 }
 0x458   :  { %v1062_v29 = vpop.f32.mrb[28].mxu0  ;;  %v1103_v30 = vpop.f32.mrb[28].mxu1 }
 0x459   :  { %v1110_v13 = vadd.f32 %v1062_v29, %v2718_v14  ;;  %v1112_v17 = vadd.f32 %v1103_v30, %v2719_v15  ;;  %v1064_v16 = vpop.f32.mrb[29].mxu0  ;;  %v1105_v18 = vpop.f32.mrb[29].mxu1 }
 0x45a   :  { %v1111_v19 = vadd.f32 %v1064_v16, %v2720_v0  ;;  %v1113_v26 = vadd.f32 %v1105_v18, %v2721_v20  ;;  %v1066_v8 = vpop.f32.mrb[30].mxu0  ;;  %v1107_v23 = vpop.f32.mrb[30].mxu1 }
 0x45b   :  { %v1699_v25 = vmul.f32 -1.442695, %v1110_v13  ;;  %v1067_v27 = vpop.f32.mrb[31].mxu0  ;;  %v1108_v44 = vpop.f32.mrb[31].mxu1 }
 0x45c   :  { %v1700_v33 = vmul.f32 -1.442695, %v1111_v19  ;;  %v1701_v34 = vmul.f32 -1.442695, %v1113_v26 }
 0x45d   :  { %1871 = vpow2.f32 %v1699_v25 }
 0x45e   :  { %1873 = vpow2.f32 %v1700_v33 }
 0x45f   :  { %1875 = vpow2.f32 %v1701_v34 }
 0x460   :  { %1877 = vtanh.f32 %v1112_v17 }
 0x467   :  { %v1872_v31 = vpop.eup %1871 }
 0x468   :  { %v1874_v35 = vpop.eup %1873  ;;  %v1117_v53 = vadd.f32 1.0, %v1872_v31  ;;  %v2560_v31 = vld [vmem:[#allocation8] ss:$16 sps:$4 sm:$0xff]  }
 0x469   :  { %v1123_v28 = vadd.f32 1.0, %v1874_v35  ;;  %v1876_v24 = vpop.eup %1875  ;;  %v2563_v35 = vld [vmem:[#allocation8 + $0x8] ss:$16 sps:$4 sm:$0xff]  }
 0x46a   :  { %1879 = vrcp.f32 %v1117_v53  ;;  %v1878_v10 = vpop.eup %1877  ;;  %v1130_v7 = vadd.f32 1.0, %v1876_v24  ;;  %v2566_v53 = vld [vmem:[#allocation8 + $0x24] ss:$16 sps:$4 sm:$0xff]   ;;  %v2574_v24 = vld [vmem:[#allocation8 + $0x20] ss:$16 sps:$4 sm:$0xff]  }
 0x46b   :  { %1881 = vrcp.f32 %v1123_v28  ;;  %v2569_v28 = vld [vmem:[#allocation8 + $0x2c] ss:$16 sps:$4 sm:$0xff]  }
 0x46c   :  { %1883 = vrcp.f32 %v1130_v7  ;;  %v2589_v7 = vld [vmem:[#allocation8 + $0x48] ss:$16 sps:$4 sm:$0xff]  }
 0x474   :  { %v1880_v32 = vpop.eup %1879 }
 0x475   :  { %v1882_v9 = vpop.eup %1881  ;;  %v1134_v12 = vmul.f32 %v1880_v32, %v1878_v10  ;;  %v2577_v10 = vld [vmem:[#allocation8 + $0x28] ss:$16 sps:$4 sm:$0xff]   ;;  %v2580_v32 = vld [vmem:[#allocation8 + $0x44] ss:$16 sps:$4 sm:$0xff]  }
 0x476   :  { %v1133_v11 = vmul.f32 %v1882_v9, %v2469_v62  ;;  %v1884_v22 = vpop.eup %1883  ;;  %v2583_v9 = vld [vmem:[#allocation8 + $0x4c] ss:$16 sps:$4 sm:$0xff]  }
 0x478   :  { %v2511_v6 = vadd.f32 %v1134_v12, %v1133_v11  ;;  %v2586_v12 = vld [vmem:[#allocation8 + $0x40] ss:$16 sps:$4 sm:$0xff]   ;;  %v2592_v11 = vld [vmem:[#allocation8 + $0x64] ss:$16 sps:$4 sm:$0xff]  }
 0x47a   :  { %1885 = vtanh.f32 %v2511_v6 }
 0x484   :  { %v1886_v29 = vpop.eup %1885 }
 0x485   :  { %v1137_v30 = vmul.f32 %v1886_v29, %v1884_v22  ;;  %v2598_v22 = vld [vmem:[#allocation8 + $0x60] ss:$16 sps:$4 sm:$0xff]   ;;  %v2601_v29 = vld [vmem:[#allocation8 + $0x68] ss:$16 sps:$4 sm:$0xff]  }
 0x487   :  { %v1138_v14 = vpack.c.bf16 %v1137_v30, %v1137_v30  ;;  %v2604_v30 = vld [vmem:[#allocation8 + $0x84] ss:$16 sps:$4 sm:$0xff]  }
 0x489   :  { %1139 = vst [vmem:[#allocation9 + $0xc] sm:$0xf] %v1138_v14  ;;  %1177 = vmatmul.mubr.bf16.vlgmr.msra.gmra.mrb[32].mxu0 %v1138_v14  ;;  %1218 = vmatmul.mubr.bf16.vlgmr.msra.gmra.mrb[32].mxu1 %v1138_v14  ;;  %v2607_v14 = vld [vmem:[#allocation8 + $0x8c] ss:$16 sps:$4 sm:$0xff]  }
 0x48a   :  { %1261 = vmatpush1.bf16.msra.mxu0 %v2162_v36  ;;  %1302 = vmatpush1.bf16.msra.mxu1 %v2164_v37  ;;  %v2546_v36 = vld [vmem:[#allocation8 + $0x4] ss:$16 sps:$4 sm:$0xff]   ;;  %v2549_v37 = vld [vmem:[#allocation8 + $0xc] ss:$16 sps:$4 sm:$0xff]  }
 0x48b   :  { %1262 = vmatprep.subr.bf16.mxu0 %v2168_v38  ;;  %1303 = vmatprep.subr.bf16.mxu1 %v2170_v39 }
 0x48c   :  { %1292 = vmatprep.mubr.bf16.mxu0 %v2716_v21  ;;  %1333 = vmatprep.mubr.bf16.mxu1 %v2716_v21 }
 0x48e   :  { %1263 = vmatpush1.bf16.msra.mxu0 %v2172_v40  ;;  %1304 = vmatpush1.bf16.msra.mxu1 %v2176_v41  ;;  %v2722_v40 = vld [vmem:[#allocation18_spill] sm:$0xff] }
 0x48f   :  { %1264 = vmatprep.subr.bf16.mxu0 %v2180_v42  ;;  %1305 = vmatprep.subr.bf16.mxu1 %v2182_v43  ;;  %v2723_v42 = vld [vmem:[#allocation19_spill] sm:$0xff] }
 0x492   :  { %1265 = vmatpush1.bf16.msra.mxu0 %v2186_v45  ;;  %1306 = vmatpush1.bf16.msra.mxu1 %v2188_v46 }
 0x493   :  { %1266 = vmatprep.subr.bf16.mxu0 %v2192_v47  ;;  %1307 = vmatprep.subr.bf16.mxu1 %v2196_v48  ;;  %v2724_v47 = vld [vmem:[#allocation20_spill] sm:$0xff] }
 0x496   :  { %1267 = vmatpush1.bf16.msra.mxu0 %v2198_v49  ;;  %1308 = vmatpush1.bf16.msra.mxu1 %v2200_v50  ;;  %v2725_v49 = vld [vmem:[#allocation21_spill] sm:$0xff] }
 0x497   :  { %1268 = vmatprep.subr.bf16.mxu0 %v2204_v51  ;;  %1309 = vmatprep.subr.bf16.mxu1 %v2208_v52 }
 0x49a   :  { %1269 = vmatpush1.bf16.msra.mxu0 %v2214_v54  ;;  %1310 = vmatpush1.bf16.msra.mxu1 %v2216_v55 }
 0x49b   :  { %1270 = vmatprep.subr.bf16.mxu0 %v2220_v56  ;;  %1311 = vmatprep.subr.bf16.mxu1 %v2222_v57 }
 0x49e   :  { %1271 = vmatpush1.bf16.msra.mxu0 %v2226_v58  ;;  %1312 = vmatpush1.bf16.msra.mxu1 %v2228_v59 }
 0x49f   :  { %1272 = vmatprep.subr.bf16.mxu0 %v2232_v60  ;;  %1313 = vmatprep.subr.bf16.mxu1 %v2234_v61 }
 0x4a2   :  { %1273 = vmatpush1.bf16.msra.mxu0 %v2240_v63  ;;  %1314 = vmatpush1.bf16.msra.mxu1 %v2242_v1 }
 0x4a3   :  { %1274 = vmatprep.subr.bf16.mxu0 %v2246_v2  ;;  %1315 = vmatprep.subr.bf16.mxu1 %v2248_v3 }
 0x4a6   :  { %1275 = vmatpush1.bf16.msra.mxu0 %v2252_v4  ;;  %1316 = vmatpush1.bf16.msra.mxu1 %v2254_v5 }
 0x4a7   :  { %1376 = vmatprep.subr.bf16.mxu0 %v2546_v36  ;;  %1417 = vmatprep.subr.bf16.mxu1 %v2549_v37 }
 0x55c   :  { %v1178_v38 = vpop.f32.mrb[32].mxu0  ;;  %v1219_v39 = vpop.f32.mrb[32].mxu1 }
 0x55d   :  { %v1226_v41 = vadd.f32 %v1178_v38, %v2722_v40  ;;  %v1228_v43 = vadd.f32 %v1219_v39, %v2723_v42  ;;  %v1180_v45 = vpop.f32.mrb[33].mxu0  ;;  %v1221_v46 = vpop.f32.mrb[33].mxu1  ;;  %v2610_v38 = vld [vmem:[#allocation8 + $0x80] ss:$16 sps:$4 sm:$0xff]   ;;  %v2613_v39 = vld [vmem:[#allocation8 + $0x88] ss:$16 sps:$4 sm:$0xff]  }
 0x55e   :  { %v1227_v48 = vadd.f32 %v1180_v45, %v2724_v47  ;;  %v1229_v50 = vadd.f32 %v1221_v46, %v2725_v49  ;;  %v1182_v51 = vpop.f32.mrb[34].mxu0  ;;  %v1223_v52 = vpop.f32.mrb[34].mxu1  ;;  %v2616_v40 = vld [vmem:[#allocation8 + $0xa4] ss:$16 sps:$4 sm:$0xff]   ;;  %v2728_v45 = vld [vmem:[#allocation24_spill] sm:$0xff] }
 0x55f   :  { %v1702_v54 = vmul.f32 -1.442695, %v1226_v41  ;;  %v1183_v55 = vpop.f32.mrb[35].mxu0  ;;  %v1224_v56 = vpop.f32.mrb[35].mxu1  ;;  %v2619_v41 = vld [vmem:[#allocation8 + $0xac] ss:$16 sps:$4 sm:$0xff]  }
 0x560   :  { %v1703_v57 = vmul.f32 -1.442695, %v1227_v48  ;;  %v1704_v62 = vmul.f32 -1.442695, %v1229_v50  ;;  %v2727_v42 = vld [vmem:[#allocation23_spill] sm:$0xff]  ;;  %v2729_v46 = vld [vmem:[#allocation25_spill] sm:$0xff] }
 0x561   :  { %1887 = vpow2.f32 %v1702_v54 }
 0x562   :  { %1889 = vpow2.f32 %v1703_v57 }
 0x563   :  { %1891 = vpow2.f32 %v1704_v62 }
 0x564   :  { %1893 = vtanh.f32 %v1228_v43 }
 0x56b   :  { %v1888_v13 = vpop.eup %1887 }
 0x56c   :  { %v1890_v15 = vpop.eup %1889  ;;  %v1233_v17 = vadd.f32 1.0, %v1888_v13 }
 0x56d   :  { %v1239_v16 = vadd.f32 1.0, %v1890_v15  ;;  %v1892_v18 = vpop.eup %1891 }
 0x56e   :  { %1895 = vrcp.f32 %v1233_v17  ;;  %v1894_v0 = vpop.eup %1893  ;;  %v1246_v8 = vadd.f32 1.0, %v1892_v18 }
 0x56f   :  { %1897 = vrcp.f32 %v1239_v16 }
 0x570   :  { %1899 = vrcp.f32 %v1246_v8  ;;  %v1975_v8 = vld [vmem:[#allocation8 + $0xc4] ss:$16 sps:$4 sm:$0xff]  }
 0x578   :  { %v1896_v19 = vpop.eup %1895 }
 0x579   :  { %v1898_v20 = vpop.eup %1897  ;;  %v1250_v26 = vmul.f32 %v1896_v19, %v1894_v0 }
 0x57a   :  { %v1249_v23 = vmul.f32 %v1898_v20, %v2511_v6  ;;  %v1900_v27 = vpop.eup %1899  ;;  %v2595_v6 = vld [vmem:[#allocation8 + $0x6c] ss:$16 sps:$4 sm:$0xff]  }
 0x57c   :  { %v2557_v25 = vadd.f32 %v1250_v26, %v1249_v23  ;;  %v1974_v26 = vld [vmem:[#allocation8 + $0xa8] ss:$16 sps:$4 sm:$0xff]   ;;  %v1976_v23 = vld [vmem:[#allocation8 + $0xcc] ss:$16 sps:$4 sm:$0xff]  }
 0x57e   :  { %1901 = vtanh.f32 %v2557_v25 }
 0x588   :  { %v1902_v44 = vpop.eup %1901 }
 0x589   :  { %v1253_v33 = vmul.f32 %v1902_v44, %v1900_v27  ;;  %v1978_v27 = vld [vmem:[#allocation8 + $0xc8] ss:$16 sps:$4 sm:$0xff]   ;;  %v1979_v44 = vld [vmem:[#allocation8 + $0xe4] ss:$16 sps:$4 sm:$0xff]  }
 0x58b   :  { %v1254_v34 = vpack.c.bf16 %v1253_v33, %v1253_v33  ;;  %v1980_v33 = vld [vmem:[#allocation8 + $0xec] ss:$16 sps:$4 sm:$0xff]  }
 0x58d   :  { %1255 = vst [vmem:[#allocation9 + $0x10] sm:$0xf] %v1254_v34  ;;  %1293 = vmatmul.mubr.bf16.vlgmr.msra.gmra.mrb[36].mxu0 %v1254_v34  ;;  %1334 = vmatmul.mubr.bf16.vlgmr.msra.gmra.mrb[36].mxu1 %v1254_v34  ;;  %v1981_v34 = vld [vmem:[#allocation8 + $0xe0] ss:$16 sps:$4 sm:$0xff]  }
 0x58e   :  { %1377 = vmatpush1.bf16.msra.mxu0 %v2560_v31  ;;  %1418 = vmatpush1.bf16.msra.mxu1 %v2563_v35 }
 0x58f   :  { %1378 = vmatprep.subr.bf16.mxu0 %v2566_v53  ;;  %1419 = vmatprep.subr.bf16.mxu1 %v2569_v28 }
 0x590   :  { %1408 = vmatprep.mubr.bf16.mxu0 %v2716_v21  ;;  %1449 = vmatprep.mubr.bf16.mxu1 %v2716_v21 }
 0x592   :  { %1379 = vmatpush1.bf16.msra.mxu0 %v2574_v24  ;;  %1420 = vmatpush1.bf16.msra.mxu1 %v2577_v10 }
 0x593   :  { %1380 = vmatprep.subr.bf16.mxu0 %v2580_v32  ;;  %1421 = vmatprep.subr.bf16.mxu1 %v2583_v9 }
 0x596   :  { %1381 = vmatpush1.bf16.msra.mxu0 %v2586_v12  ;;  %1422 = vmatpush1.bf16.msra.mxu1 %v2589_v7 }
 0x597   :  { %1382 = vmatprep.subr.bf16.mxu0 %v2592_v11  ;;  %1423 = vmatprep.subr.bf16.mxu1 %v2595_v6 }
 0x59a   :  { %1383 = vmatpush1.bf16.msra.mxu0 %v2598_v22  ;;  %1424 = vmatpush1.bf16.msra.mxu1 %v2601_v29 }
 0x59b   :  { %1384 = vmatprep.subr.bf16.mxu0 %v2604_v30  ;;  %1425 = vmatprep.subr.bf16.mxu1 %v2607_v14 }
 0x59e   :  { %1385 = vmatpush1.bf16.msra.mxu0 %v2610_v38  ;;  %1426 = vmatpush1.bf16.msra.mxu1 %v2613_v39 }
 0x59f   :  { %1386 = vmatprep.subr.bf16.mxu0 %v2616_v40  ;;  %1427 = vmatprep.subr.bf16.mxu1 %v2619_v41 }
 0x5a2   :  { %1387 = vmatpush1.bf16.msra.mxu0 %v2226_v58  ;;  %1428 = vmatpush1.bf16.msra.mxu1 %v2228_v59 }
 0x5a3   :  { %1388 = vmatprep.subr.bf16.mxu0 %v2232_v60  ;;  %1429 = vmatprep.subr.bf16.mxu1 %v2234_v61  ;;  %v2726_v60 = vld [vmem:[#allocation22_spill] sm:$0xff] }
 0x5a6   :  { %1389 = vmatpush1.bf16.msra.mxu0 %v2240_v63  ;;  %1430 = vmatpush1.bf16.msra.mxu1 %v2242_v1 }
 0x5a7   :  { %1390 = vmatprep.subr.bf16.mxu0 %v2246_v2  ;;  %1431 = vmatprep.subr.bf16.mxu1 %v2248_v3 }
 0x5aa   :  { %1391 = vmatpush1.bf16.msra.mxu0 %v2252_v4  ;;  %1432 = vmatpush1.bf16.msra.mxu1 %v2254_v5 }
 0x5ab   :  { %1492 = vmatprep.subr.bf16.mxu0 %v2546_v36  ;;  %1533 = vmatprep.subr.bf16.mxu1 %v2549_v37 }
 0x660   :  { %v1294_v58 = vpop.f32.mrb[36].mxu0  ;;  %v1335_v59 = vpop.f32.mrb[36].mxu1 }
 0x661   :  { %v1342_v61 = vadd.f32 %v1294_v58, %v2726_v60  ;;  %v1344_v63 = vadd.f32 %v1335_v59, %v2727_v42  ;;  %v1296_v43 = vpop.f32.mrb[37].mxu0  ;;  %v1337_v1 = vpop.f32.mrb[37].mxu1 }
 0x662   :  { %v1343_v2 = vadd.f32 %v1296_v43, %v2728_v45  ;;  %v1345_v3 = vadd.f32 %v1337_v1, %v2729_v46  ;;  %v1298_v47 = vpop.f32.mrb[38].mxu0  ;;  %v1339_v4 = vpop.f32.mrb[38].mxu1 }
 0x663   :  { %v1705_v48 = vmul.f32 -1.442695, %v1342_v61  ;;  %v1299_v5 = vpop.f32.mrb[39].mxu0  ;;  %v1340_v49 = vpop.f32.mrb[39].mxu1 }
 0x664   :  { %v1706_v36 = vmul.f32 -1.442695, %v1343_v2  ;;  %v1707_v37 = vmul.f32 -1.442695, %v1345_v3 }
 0x665   :  { %1903 = vpow2.f32 %v1705_v48 }
 0x666   :  { %1905 = vpow2.f32 %v1706_v36 }
 0x667   :  { %1907 = vpow2.f32 %v1707_v37  ;;  %v2734_v37 = vld [vmem:[#allocation30_spill] sm:$0xff] }
 0x668   :  { %1909 = vtanh.f32 %v1344_v63 }
 0x66f   :  { %v1904_v50 = vpop.eup %1903 }
 0x670   :  { %v1906_v51 = vpop.eup %1905  ;;  %v1349_v52 = vadd.f32 1.0, %v1904_v50 }
 0x671   :  { %v1355_v54 = vadd.f32 1.0, %v1906_v51  ;;  %v1908_v55 = vpop.eup %1907  ;;  %v2735_v51 = vld [vmem:[#allocation31_spill] sm:$0xff] }
 0x672   :  { %1911 = vrcp.f32 %v1349_v52  ;;  %v1910_v56 = vpop.eup %1909  ;;  %v1362_v15 = vadd.f32 1.0, %v1908_v55 }
 0x673   :  { %1913 = vrcp.f32 %v1355_v54 }
 0x674   :  { %1915 = vrcp.f32 %v1362_v15 }
 0x67c   :  { %v1912_v57 = vpop.eup %1911 }
 0x67d   :  { %v1914_v62 = vpop.eup %1913  ;;  %v1366_v13 = vmul.f32 %v1912_v57, %v1910_v56  ;;  %v2736_v56 = vld [vmem:[#allocation32_spill] sm:$0xff] }
 0x67e   :  { %v1365_v17 = vmul.f32 %v1914_v62, %v2557_v25  ;;  %v1916_v18 = vpop.eup %1915  ;;  %v1977_v25 = vld [vmem:[#allocation8 + $0xc0] ss:$16 sps:$4 sm:$0xff]  }
 0x67f   :  { %v2737_v62 = vld [vmem:[#allocation33_spill] sm:$0xff] }
 0x680   :  { %v2639_v16 = vadd.f32 %v1366_v13, %v1365_v17 }
 0x682   :  { %1917 = vtanh.f32 %v2639_v16 }
 0x68c   :  { %v1918_v0 = vpop.eup %1917 }
 0x68d   :  { %v1369_v19 = vmul.f32 %v1918_v0, %v1916_v18 }
 0x68f   :  { %v1370_v20 = vpack.c.bf16 %v1369_v19, %v1369_v19 }
 0x691   :  { %1371 = vst [vmem:[#allocation9 + $0x14] sm:$0xf] %v1370_v20  ;;  %1409 = vmatmul.mubr.bf16.vlgmr.msra.gmra.mrb[40].mxu0 %v1370_v20  ;;  %1450 = vmatmul.mubr.bf16.vlgmr.msra.gmra.mrb[40].mxu1 %v1370_v20 }
 0x692   :  { %1493 = vmatpush1.bf16.msra.mxu0 %v2560_v31  ;;  %1534 = vmatpush1.bf16.msra.mxu1 %v2563_v35  ;;  %v1982_v31 = vld [vmem:[#allocation8 + $0xe8] ss:$16 sps:$4 sm:$0xff]  }
 0x693   :  { %1494 = vmatprep.subr.bf16.mxu0 %v2566_v53  ;;  %1535 = vmatprep.subr.bf16.mxu1 %v2569_v28  ;;  %v2730_v28 = vld [vmem:[#allocation26_spill] sm:$0xff] }
 0x694   :  { %1524 = vmatprep.mubr.bf16.mxu0 %v2716_v21  ;;  %1565 = vmatprep.mubr.bf16.mxu1 %v2716_v21  ;;  %v1973_v21 = vld [vmem:[#allocation8 + $0xa0] ss:$16 sps:$4 sm:$0xff]  }
 0x696   :  { %1495 = vmatpush1.bf16.msra.mxu0 %v2574_v24  ;;  %1536 = vmatpush1.bf16.msra.mxu1 %v2577_v10  ;;  %v2731_v10 = vld [vmem:[#allocation27_spill] sm:$0xff] }
 0x697   :  { %1496 = vmatprep.subr.bf16.mxu0 %v2580_v32  ;;  %1537 = vmatprep.subr.bf16.mxu1 %v2583_v9 }
 0x69a   :  { %1497 = vmatpush1.bf16.msra.mxu0 %v2586_v12  ;;  %1538 = vmatpush1.bf16.msra.mxu1 %v2589_v7  ;;  %v2732_v7 = vld [vmem:[#allocation28_spill] sm:$0xff] }
 0x69b   :  { %1498 = vmatprep.subr.bf16.mxu0 %v2592_v11  ;;  %1539 = vmatprep.subr.bf16.mxu1 %v2595_v6  ;;  %v2733_v6 = vld [vmem:[#allocation29_spill] sm:$0xff] }
 0x69e   :  { %1499 = vmatpush1.bf16.msra.mxu0 %v2598_v22  ;;  %1540 = vmatpush1.bf16.msra.mxu1 %v2601_v29 }
 0x69f   :  { %1500 = vmatprep.subr.bf16.mxu0 %v2604_v30  ;;  %1541 = vmatprep.subr.bf16.mxu1 %v2607_v14 }
 0x6a2   :  { %1501 = vmatpush1.bf16.msra.mxu0 %v2610_v38  ;;  %1542 = vmatpush1.bf16.msra.mxu1 %v2613_v39 }
 0x6a3   :  { %1502 = vmatprep.subr.bf16.mxu0 %v2616_v40  ;;  %1543 = vmatprep.subr.bf16.mxu1 %v2619_v41 }
 0x6a6   :  { %1503 = vmatpush1.bf16.msra.mxu0 %v1973_v21  ;;  %1544 = vmatpush1.bf16.msra.mxu1 %v1974_v26 }
 0x6a7   :  { %1504 = vmatprep.subr.bf16.mxu0 %v1975_v8  ;;  %1545 = vmatprep.subr.bf16.mxu1 %v1976_v23 }
 0x6aa   :  { %1505 = vmatpush1.bf16.msra.mxu0 %v1977_v25  ;;  %1546 = vmatpush1.bf16.msra.mxu1 %v1978_v27 }
 0x6ab   :  { %1506 = vmatprep.subr.bf16.mxu0 %v1979_v44  ;;  %1547 = vmatprep.subr.bf16.mxu1 %v1980_v33 }
 0x6ae   :  { %1507 = vmatpush1.bf16.msra.mxu0 %v1981_v34  ;;  %1548 = vmatpush1.bf16.msra.mxu1 %v1982_v31 }
 0x764   :  { %v1410_v35 = vpop.f32.mrb[40].mxu0  ;;  %v1451_v53 = vpop.f32.mrb[40].mxu1 }
 0x765   :  { %v1458_v24 = vadd.f32 %v1410_v35, %v2730_v28  ;;  %v1460_v32 = vadd.f32 %v1451_v53, %v2731_v10  ;;  %v1412_v9 = vpop.f32.mrb[41].mxu0  ;;  %v1453_v12 = vpop.f32.mrb[41].mxu1 }
 0x766   :  { %v1459_v11 = vadd.f32 %v1412_v9, %v2732_v7  ;;  %v1461_v22 = vadd.f32 %v1453_v12, %v2733_v6  ;;  %v1414_v29 = vpop.f32.mrb[42].mxu0  ;;  %v1455_v30 = vpop.f32.mrb[42].mxu1 }
 0x767   :  { %v1708_v14 = vmul.f32 -1.442695, %v1458_v24  ;;  %v1415_v38 = vpop.f32.mrb[43].mxu0  ;;  %v1456_v39 = vpop.f32.mrb[43].mxu1 }
 0x768   :  { %v1709_v40 = vmul.f32 -1.442695, %v1459_v11  ;;  %v1710_v41 = vmul.f32 -1.442695, %v1461_v22 }
 0x769   :  { %1919 = vpow2.f32 %v1708_v14 }
 0x76a   :  { %1921 = vpow2.f32 %v1709_v40 }
 0x76b   :  { %1923 = vpow2.f32 %v1710_v41 }
 0x76c   :  { %1925 = vtanh.f32 %v1460_v32 }
 0x773   :  { %v1920_v58 = vpop.eup %1919 }
 0x774   :  { %v1922_v59 = vpop.eup %1921  ;;  %v1465_v60 = vadd.f32 1.0, %v1920_v58 }
 0x775   :  { %v1471_v61 = vadd.f32 1.0, %v1922_v59  ;;  %v1924_v42 = vpop.eup %1923 }
 0x776   :  { %1927 = vrcp.f32 %v1465_v60  ;;  %v1926_v63 = vpop.eup %1925  ;;  %v1478_v2 = vadd.f32 1.0, %v1924_v42 }
 0x777   :  { %1929 = vrcp.f32 %v1471_v61 }
 0x778   :  { %1931 = vrcp.f32 %v1478_v2 }
 0x780   :  { %v1928_v43 = vpop.eup %1927 }
 0x781   :  { %v1930_v1 = vpop.eup %1929  ;;  %v1482_v45 = vmul.f32 %v1928_v43, %v1926_v63 }
 0x782   :  { %v1481_v46 = vmul.f32 %v1930_v1, %v2639_v16  ;;  %v1932_v47 = vpop.eup %1931 }
 0x784   :  { %v1483_v3 = vadd.f32 %v1482_v45, %v1481_v46 }
 0x786   :  { %1933 = vtanh.f32 %v1483_v3 }
 0x790   :  { %v1934_v4 = vpop.eup %1933 }
 0x791   :  { %v1485_v48 = vmul.f32 %v1934_v4, %v1932_v47 }
 0x793   :  { %v1486_v5 = vpack.c.bf16 %v1485_v48, %v1485_v48 }
 0x795   :  { %1487 = vst [vmem:[#allocation9 + $0x18] sm:$0xf] %v1486_v5  ;;  %1525 = vmatmul.mubr.bf16.vlgmr.msra.gmra.mrb[44].mxu0 %v1486_v5  ;;  %1566 = vmatmul.mubr.bf16.vlgmr.msra.gmra.mrb[44].mxu1 %v1486_v5 }
 0x868   :  { %v1526_v49 = vpop.f32.mrb[44].mxu0  ;;  %v1567_v36 = vpop.f32.mrb[44].mxu1 }
 0x869   :  { %v1574_v50 = vadd.f32 %v1526_v49, %v2734_v37  ;;  %v1576_v52 = vadd.f32 %v1567_v36, %v2735_v51  ;;  %v1528_v54 = vpop.f32.mrb[45].mxu0  ;;  %v1569_v55 = vpop.f32.mrb[45].mxu1 }
 0x86a   :  { %v1575_v57 = vadd.f32 %v1528_v54, %v2736_v56  ;;  %v1577_v13 = vadd.f32 %v1569_v55, %v2737_v62  ;;  %v1530_v15 = vpop.f32.mrb[46].mxu0  ;;  %v1571_v17 = vpop.f32.mrb[46].mxu1 }
 0x86b   :  { %v1711_v16 = vmul.f32 -1.442695, %v1574_v50  ;;  %v1531_v18 = vpop.f32.mrb[47].mxu0  ;;  %v1572_v0 = vpop.f32.mrb[47].mxu1 }
 0x86c   :  { %v1712_v19 = vmul.f32 -1.442695, %v1575_v57  ;;  %v1713_v20 = vmul.f32 -1.442695, %v1577_v13 }
 0x86d   :  { %1935 = vpow2.f32 %v1711_v16 }
 0x86e   :  { %1937 = vpow2.f32 %v1712_v19 }
 0x86f   :  { %1939 = vpow2.f32 %v1713_v20 }
 0x870   :  { %1941 = vtanh.f32 %v1576_v52 }
 0x877   :  { %v1936_v21 = vpop.eup %1935 }
 0x878   :  { %v1938_v26 = vpop.eup %1937  ;;  %v1581_v8 = vadd.f32 1.0, %v1936_v21 }
 0x879   :  { %v1587_v23 = vadd.f32 1.0, %v1938_v26  ;;  %v1940_v25 = vpop.eup %1939 }
 0x87a   :  { %1943 = vrcp.f32 %v1581_v8  ;;  %v1942_v27 = vpop.eup %1941  ;;  %v1594_v31 = vadd.f32 1.0, %v1940_v25 }
 0x87b   :  { %1945 = vrcp.f32 %v1587_v23 }
 0x87c   :  { %1947 = vrcp.f32 %v1594_v31 }
 0x884   :  { %v1944_v44 = vpop.eup %1943 }
 0x885   :  { %v1946_v33 = vpop.eup %1945  ;;  %v1598_v34 = vmul.f32 %v1944_v44, %v1942_v27 }
 0x886   :  { %v1597_v35 = vmul.f32 %v1946_v33, %v1483_v3  ;;  %v1948_v28 = vpop.eup %1947 }
 0x888   :  { %v1599_v53 = vadd.f32 %v1598_v34, %v1597_v35 }
 0x88a   :  { %1949 = vtanh.f32 %v1599_v53 }
 0x894   :  { %v1950_v24 = vpop.eup %1949 }
 0x895   :  { %v1601_v10 = vmul.f32 %v1950_v24, %v1948_v28 }
 0x897   :  { %v1602_v32 = vpack.c.bf16 %v1601_v10, %v1601_v10 }
 0x899   :  { %1603 = vst [vmem:[#allocation9 + $0x1c] sm:$0xf] %v1602_v32 }
 0x89a   :  { %2060 = shalt.err (!%p2057_p0)
}
 0x89b   :  { %s2061_s6 = scalar_lea.hbm %s2692_s4, 512 }
 0x89c   :  { %p2062_p1 = scmp.ne.s32.totalorder %s2692_s4, %s2061_s6  ;;  %p2065_p2 = scmp.lt.u32.totalorder %s2061_s6, %s2692_s4 }
 0x89e   :  { %p2067_p3 = pnand %p2065_p2, %p2062_p1 }
 0x8a0   :  { %2070 = shalt.err (!%p2067_p3)
}
 0x8a1   :  { %1615 = dma.vmem_to_hbm [thread:$0]  %s1610_s26, 512, %s2692_s4, [#allocation5], %s2081_s1, %s2081_s1, %s2082_s13  }
 0x8a2   :  { %2075 = dma.done.wait [#allocation5], 512  }
 0x8a3   :  { %2076 = vsyncadd [#allocation5], 4294966784 }
 0x8a4   :  { %1619 = vsyncpa [#allocation4], 1 }
 0x8a5   :  { %1620 = vsyncpa [#allocation7], 1 }
 0x8a6   :  { %1621 = vsyncpa [#allocation5], 1 }

</bundles_post_ra>
